<compile_context>
chip_gen: v7x
topology: tpu7x:2x2x1
jax: 0.10.0
libtpu: 0.0.40
codegen_flags: <defaults>
</compile_context>

<pallas_src>
import functools

import jax
import jax.numpy as jnp
from jax.experimental import pallas as pl
from jax.experimental.pallas import tpu as pltpu


def _round_up(x, m):
    return ((x + m - 1) // m) * m


# ---------------------------------------------------------------------------
# Fused Pallas kernel: LSTM stack + mu head, everything resident in VMEM.
# ---------------------------------------------------------------------------
def _make_fused_kernel(layer_num, in_dim, hidden, seq_len, batch, batch_pad,
                       max_action, unbounded):
    H = hidden
    G = 4 * H                       # lane-packed gate width (i|f|g|o)
    P = max(in_dim, H) + H          # packed weight rows: [w_ih | zero pad | w_hh]
    T = seq_len
    S = batch_pad                   # batch padded to a full sublane group (mult of 8)
    B = batch
    L = layer_num

    def kernel(obs_ref, h0_ref, c0_ref, w_ref, b_ref, wmu_ref, bmu_ref,
               mu_ref, hid_ref, cell_ref, xp_ref, hseq_ref):
        # Lane mask selecting the cell-candidate gate (tanh); hoisted once.
        lane = jax.lax.broadcasted_iota(jnp.int32, (S, G), 1)
        use_tanh = jnp.logical_and(lane >= 2 * H, lane < 3 * H)

        h0_all = h0_ref[...]                              # (S, L*H) f32
        c0_all = c0_ref[...]

        hs, cs = [], []
        for l in range(L):
            din = in_dim if l == 0 else H
            w_all = w_ref[l]                              # (P, G) bf16
            w_ih = w_all[:din, :]                         # (din, G)
            w_hh = w_all[P - H:, :]                       # (H, G)
            bias = b_ref[l]                               # (1, G) f32

            # Batched-over-time input projection: ONE lane-dense matmul per
            # layer, off the recurrent critical path, spilled to VMEM scratch.
            x_all = (obs_ref[...] if l == 0 else hseq_ref[...]).astype(jnp.bfloat16)
            xp_ref[...] = (jnp.dot(x_all, w_ih,
                                   preferred_element_type=jnp.float32) + bias)

            h = h0_all[:, l * H:(l + 1) * H]              # (S, H) f32 carries
            c = c0_all[:, l * H:(l + 1) * H]
            last_layer = (l == L - 1)
            for t in range(T):
                # Serial chain: one fused (S,H)x(H,4H) MXU push per step.
                gates = xp_ref[pl.ds(t * S, S)] + jnp.dot(
                    h.astype(jnp.bfloat16), w_hh,
                    preferred_element_type=jnp.float32)   # (S, G) f32
                sig = jax.nn.sigmoid(gates)
                tnh = jnp.tanh(gates)
                act = jnp.where(use_tanh, tnh, sig)
                i_g = act[:, 0 * H:1 * H]
                f_g = act[:, 1 * H:2 * H]
                g_g = act[:, 2 * H:3 * H]
                o_g = act[:, 3 * H:4 * H]
                c = f_g * c + i_g * g_g
                h = o_g * jnp.tanh(c)
                if not last_layer:
                    hseq_ref[pl.ds(t * S, S)] = h         # next layer's input
            hs.append(h)
            cs.append(c)

        # mu head on logits = h_seq[:, -1] of the last layer.
        logits = hs[-1]                                   # (S, H)
        mu = jnp.dot(logits.astype(jnp.bfloat16), wmu_ref[...],
                     preferred_element_type=jnp.float32) + bmu_ref[...]
        if not unbounded:
            mu = max_action * jnp.tanh(mu)
        mu_ref[...] = mu[:B, :]
        hid_ref[...] = jnp.concatenate(hs, axis=-1)[:B, :]     # (B, L*H)
        cell_ref[...] = jnp.concatenate(cs, axis=-1)[:B, :]

    return kernel


@functools.partial(jax.jit, static_argnames=("max_action", "unbounded"))
def recurrent_actor_prob_forward(params, obs, state=None, max_action=1.0,
                                 unbounded=False):
    """obs: (B, T, D) or (B, D) float32.  Returns ((mu, sigma), state_dict)."""
    obs = jnp.asarray(obs, jnp.float32)
    if obs.ndim == 2:
        obs = obs[:, None, :]                             # unsqueeze(-2)
    B, T, D = obs.shape
    L, P, G = params["w_lstm"].shape
    H = G // 4
    A = params["w_mu"].shape[-1]
    S = _round_up(B, 8)                                   # padded batch rows

    # Time-major, batch padded to a sublane group, flattened to 2-D so the
    # kernel only does aligned leading-dim slices and plain 2-D matmuls.
    obs_t = jnp.transpose(obs, (1, 0, 2))                 # (T, B, D)
    if S != B:
        obs_t = jnp.pad(obs_t, ((0, 0), (0, S - B), (0, 0)))
    obs_flat = obs_t.reshape(T * S, D)

    if state is None:
        h0 = jnp.zeros((S, L * H), jnp.float32)
        c0 = jnp.zeros((S, L * H), jnp.float32)
    else:
        # state dict stores (B, L, H); flatten to (B, L*H) (free reshape).
        h0 = jnp.asarray(state["hidden"], jnp.float32).reshape(B, L * H)
        c0 = jnp.asarray(state["cell"], jnp.float32).reshape(B, L * H)
        if S != B:
            h0 = jnp.pad(h0, ((0, S - B), (0, 0)))
            c0 = jnp.pad(c0, ((0, S - B), (0, 0)))

    vspec = pl.BlockSpec(memory_space=pltpu.MemorySpace.VMEM)
    mu, hid_flat, cell_flat = pl.pallas_call(
        _make_fused_kernel(L, D, H, T, B, S, float(max_action), bool(unbounded)),
        out_shape=(jax.ShapeDtypeStruct((B, A), jnp.float32),
                   jax.ShapeDtypeStruct((B, L * H), jnp.float32),
                   jax.ShapeDtypeStruct((B, L * H), jnp.float32)),
        in_specs=[vspec] * 7,
        out_specs=(vspec, vspec, vspec),
        scratch_shapes=[pltpu.VMEM((T * S, G), jnp.float32),   # input projections
                        pltpu.VMEM((T * S, H), jnp.float32)],  # per-layer h sequence
    )(obs_flat, h0, c0, params["w_lstm"], params["b_lstm"],
      params["w_mu"], params["b_mu"])

    # conditioned_sigma=False: sigma is obs-independent; exp(sigma_param) is
    # precomputed once in init_params as params["sigma_row"].
    # TODO(synk): conditioned_sigma=True head (clamped linear sigma) not implemented.
    sigma = jnp.broadcast_to(params["sigma_row"], (B, A))
    state_out = {"hidden": hid_flat.reshape(B, L, H),
                 "cell": cell_flat.reshape(B, L, H)}
    return (mu, sigma), state_out


# ---------------------------------------------------------------------------
# Pure-JAX reference (same packed layout, same bf16 operand casts) for validation.
# ---------------------------------------------------------------------------
def _reference_forward(params, obs, state=None, max_action=1.0, unbounded=False):
    obs = jnp.asarray(obs, jnp.float32)
    if obs.ndim == 2:
        obs = obs[:, None, :]
    B, T, D = obs.shape
    L, P, G = params["w_lstm"].shape
    H = G // 4
    A = params["w_mu"].shape[-1]
    if state is None:
        h0 = jnp.zeros((B, L, H), jnp.float32)
        c0 = jnp.zeros((B, L, H), jnp.float32)
    else:
        h0 = jnp.asarray(state["hidden"], jnp.float32)
        c0 = jnp.asarray(state["cell"], jnp.float32)

    x = obs
    hs, cs = [], []
    for l in range(L):
        din = D if l == 0 else H
        w_all = params["w_lstm"][l]
        w_ih, w_hh = w_all[:din, :], w_all[P - H:, :]
        bias = params["b_lstm"][l]                        # (1, G)
        h, c = h0[:, l, :], c0[:, l, :]
        outs = []
        for t in range(T):
            xp = jnp.dot(x[:, t, :].astype(jnp.bfloat16), w_ih,
                         preferred_element_type=jnp.float32) + bias
            g_all = xp + jnp.dot(h.astype(jnp.bfloat16), w_hh,
                                 preferred_element_type=jnp.float32)
            i_g = jax.nn.sigmoid(g_all[:, 0:H])
            f_g = jax.nn.sigmoid(g_all[:, H:2 * H])
            g_g = jnp.tanh(g_all[:, 2 * H:3 * H])
            o_g = jax.nn.sigmoid(g_all[:, 3 * H:4 * H])
            c = f_g * c + i_g * g_g
            h = o_g * jnp.tanh(c)
            outs.append(h)
        x = jnp.stack(outs, axis=1)                       # (B, T, H)
        hs.append(h)
        cs.append(c)

    logits = x[:, -1, :]
    mu = jnp.dot(logits.astype(jnp.bfloat16), params["w_mu"],
                 preferred_element_type=jnp.float32) + params["b_mu"]
    if not unbounded:
        mu = max_action * jnp.tanh(mu)
    sigma = jnp.broadcast_to(params["sigma_row"], (B, A))
    return (mu, sigma), {"hidden": jnp.stack(hs, axis=1),
                         "cell": jnp.stack(cs, axis=1)}


# ---------------------------------------------------------------------------
# Parameter construction (PyTorch-style uniform(-1/sqrt(H), 1/sqrt(H)) init).
# LSTM weights are lane-packed: per layer a (max(D,H)+H, 4H) bf16 block holding
# [w_ih ; zero pad ; w_hh] with gates [i|f|g|o] along the last dim, plus a
# combined f32 bias row (1, 4H).  sigma_row = exp(sigma_param) is precomputed.
# ---------------------------------------------------------------------------
def init_params(key, layer_num, state_dim, action_dim, hidden):
    H = hidden
    G = 4 * H
    P = max(state_dim, H) + H
    bound = 1.0 / float(H) ** 0.5
    keys = jax.random.split(key, 4 * layer_num + 2)
    w_blocks, b_blocks = [], []
    for l in range(layer_num):
        in_dim = state_dim if l == 0 else H
        w_ih = jax.random.uniform(keys[4 * l + 0], (G, in_dim), jnp.float32, -bound, bound)
        w_hh = jax.random.uniform(keys[4 * l + 1], (G, H), jnp.float32, -bound, bound)
        b_ih = jax.random.uniform(keys[4 * l + 2], (G,), jnp.float32, -bound, bound)
        b_hh = jax.random.uniform(keys[4 * l + 3], (G,), jnp.float32, -bound, bound)
        pad_rows = P - H - in_dim
        blocks = [w_ih.T]                               # (in_dim, G), gate-major columns
        if pad_rows > 0:
            blocks.append(jnp.zeros((pad_rows, G), jnp.float32))
        blocks.append(w_hh.T)                           # (H, G)
        w_blocks.append(jnp.concatenate(blocks, axis=0))
        b_blocks.append((b_ih + b_hh).reshape(1, G))    # combined bias, f32
    params = {
        "w_lstm": jnp.stack(w_blocks).astype(jnp.bfloat16),   # (L, P, 4H) bf16
        "b_lstm": jnp.stack(b_blocks),                         # (L, 1, 4H) f32
    }
    w_mu = jax.random.uniform(keys[-2], (action_dim, H), jnp.float32, -bound, bound)
    b_mu = jax.random.uniform(keys[-1], (action_dim,), jnp.float32, -bound, bound)
    params["w_mu"] = w_mu.T.astype(jnp.bfloat16)               # (H, A) bf16
    params["b_mu"] = b_mu.reshape(1, action_dim)               # (1, A) f32
    # nn.Parameter(torch.zeros(output_dim, 1)); sigma_row must be refreshed via
    # refresh_sigma(params) whenever sigma_param is updated by training.
    params["sigma_param"] = jnp.zeros((action_dim, 1), jnp.float32)
    params["sigma_row"] = jnp.exp(params["sigma_param"].reshape(1, action_dim))
    return params


def refresh_sigma(params):
    params = dict(params)
    a = params["sigma_param"].shape[0]
    params["sigma_row"] = jnp.exp(params["sigma_param"].reshape(1, a))
    return params


if __name__ == "__main__":
    # Config consistent with RecurrentActorProb(layer_num=2, state_shape=(16,),
    # action_shape=(4,), hidden_layer_size=32, max_action=1.0,
    # unbounded=False, conditioned_sigma=False)
    LAYER_NUM = 2
    STATE_DIM = 16
    ACTION_DIM = 4
    HIDDEN = 32
    B, T = 2, 8

    key = jax.random.PRNGKey(0)
    pkey, okey = jax.random.split(key)
    params = init_params(pkey, LAYER_NUM, STATE_DIM, ACTION_DIM, HIDDEN)
    obs = jax.random.normal(okey, (B, T, STATE_DIM), jnp.float32)

    (mu, sigma), st = recurrent_actor_prob_forward(params, obs, state=None,
                                                   max_action=1.0, unbounded=False)
    jax.block_until_ready((mu, sigma, st["hidden"], st["cell"]))

    assert mu.shape == (B, ACTION_DIM)
    assert sigma.shape == (B, ACTION_DIM)
    assert st["hidden"].shape == (B, LAYER_NUM, HIDDEN)
    assert st["cell"].shape == (B, LAYER_NUM, HIDDEN)
    # conditioned_sigma=False with zero sigma_param -> sigma == 1
    assert bool(jnp.allclose(sigma, 1.0))

    # numeric check against the pure-JAX reference (identical math / casts)
    (mu_r, _), st_r = _reference_forward(params, obs, state=None,
                                         max_action=1.0, unbounded=False)
    assert bool(jnp.allclose(mu, mu_r, atol=2e-2, rtol=2e-2))
    assert bool(jnp.allclose(st["hidden"], st_r["hidden"], atol=2e-2, rtol=2e-2))
    assert bool(jnp.allclose(st["cell"], st_r["cell"], atol=2e-2, rtol=2e-2))

    # recurrent rollout step: 2-D obs path (T=1) with carried state
    (mu2, sigma2), st2 = recurrent_actor_prob_forward(params, obs[:, -1, :],
                                                      state=st, max_action=1.0,
                                                      unbounded=False)
    jax.block_until_ready((mu2, sigma2, st2["hidden"], st2["cell"]))
    (mu2_r, _), st2_r = _reference_forward(params, obs[:, -1, :], state=st,
                                           max_action=1.0, unbounded=False)
    assert mu2.shape == (B, ACTION_DIM)
    assert bool(jnp.allclose(mu2, mu2_r, atol=2e-2, rtol=2e-2))
    assert bool(jnp.allclose(st2["hidden"], st2_r["hidden"], atol=2e-2, rtol=2e-2))
    assert bool(jnp.allclose(st2["cell"], st2_r["cell"], atol=2e-2, rtol=2e-2))

    print("KERNEL_OK")
</pallas_src>

<mosaic_0001>
module attributes {stable_mosaic.version = 11 : i64} {
  func.func @kernel(%arg0: memref<64x16xf32, #tpu.memory_space<vmem>>, %arg1: memref<8x64xf32, #tpu.memory_space<vmem>>, %arg2: memref<8x64xf32, #tpu.memory_space<vmem>>, %arg3: memref<2x64x128xbf16, #tpu.memory_space<vmem>>, %arg4: memref<2x1x128xf32, #tpu.memory_space<vmem>>, %arg5: memref<32x4xbf16, #tpu.memory_space<vmem>>, %arg6: memref<1x4xf32, #tpu.memory_space<vmem>>, %arg7: memref<2x4xf32, #tpu.memory_space<vmem>>, %arg8: memref<2x64xf32, #tpu.memory_space<vmem>>, %arg9: memref<2x64xf32, #tpu.memory_space<vmem>>, %arg10: memref<64x128xf32, #tpu.memory_space<vmem>>, %arg11: memref<64x32xf32, #tpu.memory_space<vmem>>) attributes {dimension_semantics = [], scalar_prefetch = 0 : i64, scratch_operands = 2 : i64, tpu.core_type = #tpu.core_type<tc>} {
    %0 = tpu.iota {dimensions = array<i32: 1>} : vector<8x128xi32>
    %c64_i32 = arith.constant 64 : i32
    %1 = vector.broadcast %c64_i32 : i32 to vector<8x128xi32>
    %2 = arith.cmpi sge, %0, %1 : vector<8x128xi32>
    %c96_i32 = arith.constant 96 : i32
    %3 = vector.broadcast %c96_i32 : i32 to vector<8x128xi32>
    %4 = arith.cmpi slt, %0, %3 : vector<8x128xi32>
    %5 = arith.andi %2, %4 : vector<8x128xi1>
    %c0 = arith.constant 0 : index
    %c0_0 = arith.constant 0 : index
    %6 = vector.load %arg1[%c0, %c0_0] : memref<8x64xf32, #tpu.memory_space<vmem>>, vector<8x64xf32>
    %c0_1 = arith.constant 0 : index
    %c0_2 = arith.constant 0 : index
    %7 = vector.load %arg2[%c0_1, %c0_2] : memref<8x64xf32, #tpu.memory_space<vmem>>, vector<8x64xf32>
    %c0_3 = arith.constant 0 : index
    %c0_4 = arith.constant 0 : index
    %c0_5 = arith.constant 0 : index
    %8 = vector.load %arg3[%c0_3, %c0_4, %c0_5] : memref<2x64x128xbf16, #tpu.memory_space<vmem>>, vector<1x64x128xbf16>
    %9 = vector.shape_cast %8 : vector<1x64x128xbf16> to vector<64x128xbf16>
    %10 = vector.extract_strided_slice %9 {offsets = [0, 0], sizes = [16, 128], strides = [1, 1]} : vector<64x128xbf16> to vector<16x128xbf16>
    %11 = vector.extract_strided_slice %9 {offsets = [32, 0], sizes = [32, 128], strides = [1, 1]} : vector<64x128xbf16> to vector<32x128xbf16>
    %c0_6 = arith.constant 0 : index
    %c0_7 = arith.constant 0 : index
    %c0_8 = arith.constant 0 : index
    %12 = vector.load %arg4[%c0_6, %c0_7, %c0_8] : memref<2x1x128xf32, #tpu.memory_space<vmem>>, vector<1x1x128xf32>
    %13 = vector.shape_cast %12 : vector<1x1x128xf32> to vector<1x128xf32>
    %c0_9 = arith.constant 0 : index
    %c0_10 = arith.constant 0 : index
    %14 = vector.load %arg0[%c0_9, %c0_10] : memref<64x16xf32, #tpu.memory_space<vmem>>, vector<64x16xf32>
    %15 = arith.truncf %14 : vector<64x16xf32> to vector<64x16xbf16>
    %cst = arith.constant dense<0.000000e+00> : vector<64x128xf32>
    %16 = tpu.matmul %15, %10, %cst {dimension_numbers = #tpu.dot_dimension_numbers<[1], [0], [0], [1], [0, 0, 1, 1], [], []>} : vector<64x16xbf16>, vector<16x128xbf16>, vector<64x128xf32> -> vector<64x128xf32>
    %17 = vector.broadcast %13 : vector<1x128xf32> to vector<64x128xf32>
    %18 = arith.addf %16, %17 : vector<64x128xf32>
    %c0_11 = arith.constant 0 : index
    %c0_12 = arith.constant 0 : index
    %19 = vector.load %arg10[%c0_11, %c0_12] : memref<64x128xf32, #tpu.memory_space<vmem>>, vector<64x128xf32>
    tpu.vector_store %arg10[%c0_11, %c0_12], %18 {strides = array<i32>} : memref<64x128xf32, #tpu.memory_space<vmem>>, vector<64x128xf32>,
    %20 = vector.extract_strided_slice %6 {offsets = [0, 0], sizes = [8, 32], strides = [1, 1]} : vector<8x64xf32> to vector<8x32xf32>
    %21 = vector.extract_strided_slice %7 {offsets = [0, 0], sizes = [8, 32], strides = [1, 1]} : vector<8x64xf32> to vector<8x32xf32>
    %c0_13 = arith.constant 0 : index
    %c0_14 = arith.constant 0 : index
    %22 = vector.load %arg10[%c0_13, %c0_14] : memref<64x128xf32, #tpu.memory_space<vmem>>, vector<8x128xf32>
    %23 = arith.truncf %20 : vector<8x32xf32> to vector<8x32xbf16>
    %cst_15 = arith.constant dense<0.000000e+00> : vector<8x128xf32>
    %24 = tpu.matmul %23, %11, %cst_15 {dimension_numbers = #tpu.dot_dimension_numbers<[1], [0], [0], [1], [0, 0, 1, 1], [], []>} : vector<8x32xbf16>, vector<32x128xbf16>, vector<8x128xf32> -> vector<8x128xf32>
    %25 = arith.addf %22, %24 : vector<8x128xf32>
    %26 = arith.negf %25 : vector<8x128xf32>
    %27 = math.exp %26 : vector<8x128xf32>
    %cst_16 = arith.constant 1.000000e+00 : f32
    %28 = vector.broadcast %cst_16 : f32 to vector<8x128xf32>
    %29 = arith.addf %28, %27 : vector<8x128xf32>
    %30 = arith.divf %28, %29 : vector<8x128xf32>
    %31 = math.tanh %25 : vector<8x128xf32>
    %32 = arith.select %5, %31, %30 : vector<8x128xi1>, vector<8x128xf32>
    %33 = vector.extract_strided_slice %32 {offsets = [0, 0], sizes = [8, 32], strides = [1, 1]} : vector<8x128xf32> to vector<8x32xf32>
    %34 = vector.extract_strided_slice %32 {offsets = [0, 32], sizes = [8, 32], strides = [1, 1]} : vector<8x128xf32> to vector<8x32xf32>
    %35 = vector.extract_strided_slice %32 {offsets = [0, 64], sizes = [8, 32], strides = [1, 1]} : vector<8x128xf32> to vector<8x32xf32>
    %36 = vector.extract_strided_slice %32 {offsets = [0, 96], sizes = [8, 32], strides = [1, 1]} : vector<8x128xf32> to vector<8x32xf32>
    %37 = arith.mulf %34, %21 : vector<8x32xf32>
    %38 = arith.mulf %33, %35 : vector<8x32xf32>
    %39 = arith.addf %37, %38 : vector<8x32xf32>
    %40 = math.tanh %39 : vector<8x32xf32>
    %41 = arith.mulf %36, %40 : vector<8x32xf32>
    %c0_17 = arith.constant 0 : index
    %c0_18 = arith.constant 0 : index
    %42 = vector.load %arg11[%c0_17, %c0_18] : memref<64x32xf32, #tpu.memory_space<vmem>>, vector<8x32xf32>
    tpu.vector_store %arg11[%c0_17, %c0_18], %41 {strides = array<i32>} : memref<64x32xf32, #tpu.memory_space<vmem>>, vector<8x32xf32>,
    %c8 = arith.constant 8 : index
    %c0_19 = arith.constant 0 : index
    %43 = vector.load %arg10[%c8, %c0_19] : memref<64x128xf32, #tpu.memory_space<vmem>>, vector<8x128xf32>
    %44 = arith.truncf %41 : vector<8x32xf32> to vector<8x32xbf16>
    %cst_20 = arith.constant dense<0.000000e+00> : vector<8x128xf32>
    %45 = tpu.matmul %44, %11, %cst_20 {dimension_numbers = #tpu.dot_dimension_numbers<[1], [0], [0], [1], [0, 0, 1, 1], [], []>} : vector<8x32xbf16>, vector<32x128xbf16>, vector<8x128xf32> -> vector<8x128xf32>
    %46 = arith.addf %43, %45 : vector<8x128xf32>
    %47 = arith.negf %46 : vector<8x128xf32>
    %48 = math.exp %47 : vector<8x128xf32>
    %cst_21 = arith.constant 1.000000e+00 : f32
    %49 = vector.broadcast %cst_21 : f32 to vector<8x128xf32>
    %50 = arith.addf %49, %48 : vector<8x128xf32>
    %51 = arith.divf %49, %50 : vector<8x128xf32>
    %52 = math.tanh %46 : vector<8x128xf32>
    %53 = arith.select %5, %52, %51 : vector<8x128xi1>, vector<8x128xf32>
    %54 = vector.extract_strided_slice %53 {offsets = [0, 0], sizes = [8, 32], strides = [1, 1]} : vector<8x128xf32> to vector<8x32xf32>
    %55 = vector.extract_strided_slice %53 {offsets = [0, 32], sizes = [8, 32], strides = [1, 1]} : vector<8x128xf32> to vector<8x32xf32>
    %56 = vector.extract_strided_slice %53 {offsets = [0, 64], sizes = [8, 32], strides = [1, 1]} : vector<8x128xf32> to vector<8x32xf32>
    %57 = vector.extract_strided_slice %53 {offsets = [0, 96], sizes = [8, 32], strides = [1, 1]} : vector<8x128xf32> to vector<8x32xf32>
    %58 = arith.mulf %55, %39 : vector<8x32xf32>
    %59 = arith.mulf %54, %56 : vector<8x32xf32>
    %60 = arith.addf %58, %59 : vector<8x32xf32>
    %61 = math.tanh %60 : vector<8x32xf32>
    %62 = arith.mulf %57, %61 : vector<8x32xf32>
    %c8_22 = arith.constant 8 : index
    %c0_23 = arith.constant 0 : index
    %63 = vector.load %arg11[%c8_22, %c0_23] : memref<64x32xf32, #tpu.memory_space<vmem>>, vector<8x32xf32>
    tpu.vector_store %arg11[%c8_22, %c0_23], %62 {strides = array<i32>} : memref<64x32xf32, #tpu.memory_space<vmem>>, vector<8x32xf32>,
    %c16 = arith.constant 16 : index
    %c0_24 = arith.constant 0 : index
    %64 = vector.load %arg10[%c16, %c0_24] : memref<64x128xf32, #tpu.memory_space<vmem>>, vector<8x128xf32>
    %65 = arith.truncf %62 : vector<8x32xf32> to vector<8x32xbf16>
    %cst_25 = arith.constant dense<0.000000e+00> : vector<8x128xf32>
    %66 = tpu.matmul %65, %11, %cst_25 {dimension_numbers = #tpu.dot_dimension_numbers<[1], [0], [0], [1], [0, 0, 1, 1], [], []>} : vector<8x32xbf16>, vector<32x128xbf16>, vector<8x128xf32> -> vector<8x128xf32>
    %67 = arith.addf %64, %66 : vector<8x128xf32>
    %68 = arith.negf %67 : vector<8x128xf32>
    %69 = math.exp %68 : vector<8x128xf32>
    %cst_26 = arith.constant 1.000000e+00 : f32
    %70 = vector.broadcast %cst_26 : f32 to vector<8x128xf32>
    %71 = arith.addf %70, %69 : vector<8x128xf32>
    %72 = arith.divf %70, %71 : vector<8x128xf32>
    %73 = math.tanh %67 : vector<8x128xf32>
    %74 = arith.select %5, %73, %72 : vector<8x128xi1>, vector<8x128xf32>
    %75 = vector.extract_strided_slice %74 {offsets = [0, 0], sizes = [8, 32], strides = [1, 1]} : vector<8x128xf32> to vector<8x32xf32>
    %76 = vector.extract_strided_slice %74 {offsets = [0, 32], sizes = [8, 32], strides = [1, 1]} : vector<8x128xf32> to vector<8x32xf32>
    %77 = vector.extract_strided_slice %74 {offsets = [0, 64], sizes = [8, 32], strides = [1, 1]} : vector<8x128xf32> to vector<8x32xf32>
    %78 = vector.extract_strided_slice %74 {offsets = [0, 96], sizes = [8, 32], strides = [1, 1]} : vector<8x128xf32> to vector<8x32xf32>
    %79 = arith.mulf %76, %60 : vector<8x32xf32>
    %80 = arith.mulf %75, %77 : vector<8x32xf32>
    %81 = arith.addf %79, %80 : vector<8x32xf32>
    %82 = math.tanh %81 : vector<8x32xf32>
    %83 = arith.mulf %78, %82 : vector<8x32xf32>
    %c16_27 = arith.constant 16 : index
    %c0_28 = arith.constant 0 : index
    %84 = vector.load %arg11[%c16_27, %c0_28] : memref<64x32xf32, #tpu.memory_space<vmem>>, vector<8x32xf32>
    tpu.vector_store %arg11[%c16_27, %c0_28], %83 {strides = array<i32>} : memref<64x32xf32, #tpu.memory_space<vmem>>, vector<8x32xf32>,
    %c24 = arith.constant 24 : index
    %c0_29 = arith.constant 0 : index
    %85 = vector.load %arg10[%c24, %c0_29] : memref<64x128xf32, #tpu.memory_space<vmem>>, vector<8x128xf32>
    %86 = arith.truncf %83 : vector<8x32xf32> to vector<8x32xbf16>
    %cst_30 = arith.constant dense<0.000000e+00> : vector<8x128xf32>
    %87 = tpu.matmul %86, %11, %cst_30 {dimension_numbers = #tpu.dot_dimension_numbers<[1], [0], [0], [1], [0, 0, 1, 1], [], []>} : vector<8x32xbf16>, vector<32x128xbf16>, vector<8x128xf32> -> vector<8x128xf32>
    %88 = arith.addf %85, %87 : vector<8x128xf32>
    %89 = arith.negf %88 : vector<8x128xf32>
    %90 = math.exp %89 : vector<8x128xf32>
    %cst_31 = arith.constant 1.000000e+00 : f32
    %91 = vector.broadcast %cst_31 : f32 to vector<8x128xf32>
    %92 = arith.addf %91, %90 : vector<8x128xf32>
    %93 = arith.divf %91, %92 : vector<8x128xf32>
    %94 = math.tanh %88 : vector<8x128xf32>
    %95 = arith.select %5, %94, %93 : vector<8x128xi1>, vector<8x128xf32>
    %96 = vector.extract_strided_slice %95 {offsets = [0, 0], sizes = [8, 32], strides = [1, 1]} : vector<8x128xf32> to vector<8x32xf32>
    %97 = vector.extract_strided_slice %95 {offsets = [0, 32], sizes = [8, 32], strides = [1, 1]} : vector<8x128xf32> to vector<8x32xf32>
    %98 = vector.extract_strided_slice %95 {offsets = [0, 64], sizes = [8, 32], strides = [1, 1]} : vector<8x128xf32> to vector<8x32xf32>
    %99 = vector.extract_strided_slice %95 {offsets = [0, 96], sizes = [8, 32], strides = [1, 1]} : vector<8x128xf32> to vector<8x32xf32>
    %100 = arith.mulf %97, %81 : vector<8x32xf32>
    %101 = arith.mulf %96, %98 : vector<8x32xf32>
    %102 = arith.addf %100, %101 : vector<8x32xf32>
    %103 = math.tanh %102 : vector<8x32xf32>
    %104 = arith.mulf %99, %103 : vector<8x32xf32>
    %c24_32 = arith.constant 24 : index
    %c0_33 = arith.constant 0 : index
    %105 = vector.load %arg11[%c24_32, %c0_33] : memref<64x32xf32, #tpu.memory_space<vmem>>, vector<8x32xf32>
    tpu.vector_store %arg11[%c24_32, %c0_33], %104 {strides = array<i32>} : memref<64x32xf32, #tpu.memory_space<vmem>>, vector<8x32xf32>,
    %c32 = arith.constant 32 : index
    %c0_34 = arith.constant 0 : index
    %106 = vector.load %arg10[%c32, %c0_34] : memref<64x128xf32, #tpu.memory_space<vmem>>, vector<8x128xf32>
    %107 = arith.truncf %104 : vector<8x32xf32> to vector<8x32xbf16>
    %cst_35 = arith.constant dense<0.000000e+00> : vector<8x128xf32>
    %108 = tpu.matmul %107, %11, %cst_35 {dimension_numbers = #tpu.dot_dimension_numbers<[1], [0], [0], [1], [0, 0, 1, 1], [], []>} : vector<8x32xbf16>, vector<32x128xbf16>, vector<8x128xf32> -> vector<8x128xf32>
    %109 = arith.addf %106, %108 : vector<8x128xf32>
    %110 = arith.negf %109 : vector<8x128xf32>
    %111 = math.exp %110 : vector<8x128xf32>
    %cst_36 = arith.constant 1.000000e+00 : f32
    %112 = vector.broadcast %cst_36 : f32 to vector<8x128xf32>
    %113 = arith.addf %112, %111 : vector<8x128xf32>
    %114 = arith.divf %112, %113 : vector<8x128xf32>
    %115 = math.tanh %109 : vector<8x128xf32>
    %116 = arith.select %5, %115, %114 : vector<8x128xi1>, vector<8x128xf32>
    %117 = vector.extract_strided_slice %116 {offsets = [0, 0], sizes = [8, 32], strides = [1, 1]} : vector<8x128xf32> to vector<8x32xf32>
    %118 = vector.extract_strided_slice %116 {offsets = [0, 32], sizes = [8, 32], strides = [1, 1]} : vector<8x128xf32> to vector<8x32xf32>
    %119 = vector.extract_strided_slice %116 {offsets = [0, 64], sizes = [8, 32], strides = [1, 1]} : vector<8x128xf32> to vector<8x32xf32>
    %120 = vector.extract_strided_slice %116 {offsets = [0, 96], sizes = [8, 32], strides = [1, 1]} : vector<8x128xf32> to vector<8x32xf32>
    %121 = arith.mulf %118, %102 : vector<8x32xf32>
    %122 = arith.mulf %117, %119 : vector<8x32xf32>
    %123 = arith.addf %121, %122 : vector<8x32xf32>
    %124 = math.tanh %123 : vector<8x32xf32>
    %125 = arith.mulf %120, %124 : vector<8x32xf32>
    %c32_37 = arith.constant 32 : index
    %c0_38 = arith.constant 0 : index
    %126 = vector.load %arg11[%c32_37, %c0_38] : memref<64x32xf32, #tpu.memory_space<vmem>>, vector<8x32xf32>
    tpu.vector_store %arg11[%c32_37, %c0_38], %125 {strides = array<i32>} : memref<64x32xf32, #tpu.memory_space<vmem>>, vector<8x32xf32>,
    %c40 = arith.constant 40 : index
    %c0_39 = arith.constant 0 : index
    %127 = vector.load %arg10[%c40, %c0_39] : memref<64x128xf32, #tpu.memory_space<vmem>>, vector<8x128xf32>
    %128 = arith.truncf %125 : vector<8x32xf32> to vector<8x32xbf16>
    %cst_40 = arith.constant dense<0.000000e+00> : vector<8x128xf32>
    %129 = tpu.matmul %128, %11, %cst_40 {dimension_numbers = #tpu.dot_dimension_numbers<[1], [0], [0], [1], [0, 0, 1, 1], [], []>} : vector<8x32xbf16>, vector<32x128xbf16>, vector<8x128xf32> -> vector<8x128xf32>
    %130 = arith.addf %127, %129 : vector<8x128xf32>
    %131 = arith.negf %130 : vector<8x128xf32>
    %132 = math.exp %131 : vector<8x128xf32>
    %cst_41 = arith.constant 1.000000e+00 : f32
    %133 = vector.broadcast %cst_41 : f32 to vector<8x128xf32>
    %134 = arith.addf %133, %132 : vector<8x128xf32>
    %135 = arith.divf %133, %134 : vector<8x128xf32>
    %136 = math.tanh %130 : vector<8x128xf32>
    %137 = arith.select %5, %136, %135 : vector<8x128xi1>, vector<8x128xf32>
    %138 = vector.extract_strided_slice %137 {offsets = [0, 0], sizes = [8, 32], strides = [1, 1]} : vector<8x128xf32> to vector<8x32xf32>
    %139 = vector.extract_strided_slice %137 {offsets = [0, 32], sizes = [8, 32], strides = [1, 1]} : vector<8x128xf32> to vector<8x32xf32>
    %140 = vector.extract_strided_slice %137 {offsets = [0, 64], sizes = [8, 32], strides = [1, 1]} : vector<8x128xf32> to vector<8x32xf32>
    %141 = vector.extract_strided_slice %137 {offsets = [0, 96], sizes = [8, 32], strides = [1, 1]} : vector<8x128xf32> to vector<8x32xf32>
    %142 = arith.mulf %139, %123 : vector<8x32xf32>
    %143 = arith.mulf %138, %140 : vector<8x32xf32>
    %144 = arith.addf %142, %143 : vector<8x32xf32>
    %145 = math.tanh %144 : vector<8x32xf32>
    %146 = arith.mulf %141, %145 : vector<8x32xf32>
    %c40_42 = arith.constant 40 : index
    %c0_43 = arith.constant 0 : index
    %147 = vector.load %arg11[%c40_42, %c0_43] : memref<64x32xf32, #tpu.memory_space<vmem>>, vector<8x32xf32>
    tpu.vector_store %arg11[%c40_42, %c0_43], %146 {strides = array<i32>} : memref<64x32xf32, #tpu.memory_space<vmem>>, vector<8x32xf32>,
    %c48 = arith.constant 48 : index
    %c0_44 = arith.constant 0 : index
    %148 = vector.load %arg10[%c48, %c0_44] : memref<64x128xf32, #tpu.memory_space<vmem>>, vector<8x128xf32>
    %149 = arith.truncf %146 : vector<8x32xf32> to vector<8x32xbf16>
    %cst_45 = arith.constant dense<0.000000e+00> : vector<8x128xf32>
    %150 = tpu.matmul %149, %11, %cst_45 {dimension_numbers = #tpu.dot_dimension_numbers<[1], [0], [0], [1], [0, 0, 1, 1], [], []>} : vector<8x32xbf16>, vector<32x128xbf16>, vector<8x128xf32> -> vector<8x128xf32>
    %151 = arith.addf %148, %150 : vector<8x128xf32>
    %152 = arith.negf %151 : vector<8x128xf32>
    %153 = math.exp %152 : vector<8x128xf32>
    %cst_46 = arith.constant 1.000000e+00 : f32
    %154 = vector.broadcast %cst_46 : f32 to vector<8x128xf32>
    %155 = arith.addf %154, %153 : vector<8x128xf32>
    %156 = arith.divf %154, %155 : vector<8x128xf32>
    %157 = math.tanh %151 : vector<8x128xf32>
    %158 = arith.select %5, %157, %156 : vector<8x128xi1>, vector<8x128xf32>
    %159 = vector.extract_strided_slice %158 {offsets = [0, 0], sizes = [8, 32], strides = [1, 1]} : vector<8x128xf32> to vector<8x32xf32>
    %160 = vector.extract_strided_slice %158 {offsets = [0, 32], sizes = [8, 32], strides = [1, 1]} : vector<8x128xf32> to vector<8x32xf32>
    %161 = vector.extract_strided_slice %158 {offsets = [0, 64], sizes = [8, 32], strides = [1, 1]} : vector<8x128xf32> to vector<8x32xf32>
    %162 = vector.extract_strided_slice %158 {offsets = [0, 96], sizes = [8, 32], strides = [1, 1]} : vector<8x128xf32> to vector<8x32xf32>
    %163 = arith.mulf %160, %144 : vector<8x32xf32>
    %164 = arith.mulf %159, %161 : vector<8x32xf32>
    %165 = arith.addf %163, %164 : vector<8x32xf32>
    %166 = math.tanh %165 : vector<8x32xf32>
    %167 = arith.mulf %162, %166 : vector<8x32xf32>
    %c48_47 = arith.constant 48 : index
    %c0_48 = arith.constant 0 : index
    %168 = vector.load %arg11[%c48_47, %c0_48] : memref<64x32xf32, #tpu.memory_space<vmem>>, vector<8x32xf32>
    tpu.vector_store %arg11[%c48_47, %c0_48], %167 {strides = array<i32>} : memref<64x32xf32, #tpu.memory_space<vmem>>, vector<8x32xf32>,
    %c56 = arith.constant 56 : index
    %c0_49 = arith.constant 0 : index
    %169 = vector.load %arg10[%c56, %c0_49] : memref<64x128xf32, #tpu.memory_space<vmem>>, vector<8x128xf32>
    %170 = arith.truncf %167 : vector<8x32xf32> to vector<8x32xbf16>
    %cst_50 = arith.constant dense<0.000000e+00> : vector<8x128xf32>
    %171 = tpu.matmul %170, %11, %cst_50 {dimension_numbers = #tpu.dot_dimension_numbers<[1], [0], [0], [1], [0, 0, 1, 1], [], []>} : vector<8x32xbf16>, vector<32x128xbf16>, vector<8x128xf32> -> vector<8x128xf32>
    %172 = arith.addf %169, %171 : vector<8x128xf32>
    %173 = arith.negf %172 : vector<8x128xf32>
    %174 = math.exp %173 : vector<8x128xf32>
    %cst_51 = arith.constant 1.000000e+00 : f32
    %175 = vector.broadcast %cst_51 : f32 to vector<8x128xf32>
    %176 = arith.addf %175, %174 : vector<8x128xf32>
    %177 = arith.divf %175, %176 : vector<8x128xf32>
    %178 = math.tanh %172 : vector<8x128xf32>
    %179 = arith.select %5, %178, %177 : vector<8x128xi1>, vector<8x128xf32>
    %180 = vector.extract_strided_slice %179 {offsets = [0, 0], sizes = [8, 32], strides = [1, 1]} : vector<8x128xf32> to vector<8x32xf32>
    %181 = vector.extract_strided_slice %179 {offsets = [0, 32], sizes = [8, 32], strides = [1, 1]} : vector<8x128xf32> to vector<8x32xf32>
    %182 = vector.extract_strided_slice %179 {offsets = [0, 64], sizes = [8, 32], strides = [1, 1]} : vector<8x128xf32> to vector<8x32xf32>
    %183 = vector.extract_strided_slice %179 {offsets = [0, 96], sizes = [8, 32], strides = [1, 1]} : vector<8x128xf32> to vector<8x32xf32>
    %184 = arith.mulf %181, %165 : vector<8x32xf32>
    %185 = arith.mulf %180, %182 : vector<8x32xf32>
    %186 = arith.addf %184, %185 : vector<8x32xf32>
    %187 = math.tanh %186 : vector<8x32xf32>
    %188 = arith.mulf %183, %187 : vector<8x32xf32>
    %c56_52 = arith.constant 56 : index
    %c0_53 = arith.constant 0 : index
    %189 = vector.load %arg11[%c56_52, %c0_53] : memref<64x32xf32, #tpu.memory_space<vmem>>, vector<8x32xf32>
    tpu.vector_store %arg11[%c56_52, %c0_53], %188 {strides = array<i32>} : memref<64x32xf32, #tpu.memory_space<vmem>>, vector<8x32xf32>,
    %c1 = arith.constant 1 : index
    %c0_54 = arith.constant 0 : index
    %c0_55 = arith.constant 0 : index
    %190 = vector.load %arg3[%c1, %c0_54, %c0_55] : memref<2x64x128xbf16, #tpu.memory_space<vmem>>, vector<1x64x128xbf16>
    %191 = vector.shape_cast %190 : vector<1x64x128xbf16> to vector<64x128xbf16>
    %192 = vector.extract_strided_slice %191 {offsets = [0, 0], sizes = [32, 128], strides = [1, 1]} : vector<64x128xbf16> to vector<32x128xbf16>
    %193 = vector.extract_strided_slice %191 {offsets = [32, 0], sizes = [32, 128], strides = [1, 1]} : vector<64x128xbf16> to vector<32x128xbf16>
    %c1_56 = arith.constant 1 : index
    %c0_57 = arith.constant 0 : index
    %c0_58 = arith.constant 0 : index
    %194 = vector.load %arg4[%c1_56, %c0_57, %c0_58] : memref<2x1x128xf32, #tpu.memory_space<vmem>>, vector<1x1x128xf32>
    %195 = vector.shape_cast %194 : vector<1x1x128xf32> to vector<1x128xf32>
    %c0_59 = arith.constant 0 : index
    %c0_60 = arith.constant 0 : index
    %196 = vector.load %arg11[%c0_59, %c0_60] : memref<64x32xf32, #tpu.memory_space<vmem>>, vector<64x32xf32>
    %197 = arith.truncf %196 : vector<64x32xf32> to vector<64x32xbf16>
    %cst_61 = arith.constant dense<0.000000e+00> : vector<64x128xf32>
    %198 = tpu.matmul %197, %192, %cst_61 {dimension_numbers = #tpu.dot_dimension_numbers<[1], [0], [0], [1], [0, 0, 1, 1], [], []>} : vector<64x32xbf16>, vector<32x128xbf16>, vector<64x128xf32> -> vector<64x128xf32>
    %199 = vector.broadcast %195 : vector<1x128xf32> to vector<64x128xf32>
    %200 = arith.addf %198, %199 : vector<64x128xf32>
    %c0_62 = arith.constant 0 : index
    %c0_63 = arith.constant 0 : index
    %201 = vector.load %arg10[%c0_62, %c0_63] : memref<64x128xf32, #tpu.memory_space<vmem>>, vector<64x128xf32>
    tpu.vector_store %arg10[%c0_62, %c0_63], %200 {strides = array<i32>} : memref<64x128xf32, #tpu.memory_space<vmem>>, vector<64x128xf32>,
    %202 = vector.extract_strided_slice %6 {offsets = [0, 32], sizes = [8, 32], strides = [1, 1]} : vector<8x64xf32> to vector<8x32xf32>
    %203 = vector.extract_strided_slice %7 {offsets = [0, 32], sizes = [8, 32], strides = [1, 1]} : vector<8x64xf32> to vector<8x32xf32>
    %c0_64 = arith.constant 0 : index
    %c0_65 = arith.constant 0 : index
    %204 = vector.load %arg10[%c0_64, %c0_65] : memref<64x128xf32, #tpu.memory_space<vmem>>, vector<8x128xf32>
    %205 = arith.truncf %202 : vector<8x32xf32> to vector<8x32xbf16>
    %cst_66 = arith.constant dense<0.000000e+00> : vector<8x128xf32>
    %206 = tpu.matmul %205, %193, %cst_66 {dimension_numbers = #tpu.dot_dimension_numbers<[1], [0], [0], [1], [0, 0, 1, 1], [], []>} : vector<8x32xbf16>, vector<32x128xbf16>, vector<8x128xf32> -> vector<8x128xf32>
    %207 = arith.addf %204, %206 : vector<8x128xf32>
    %208 = arith.negf %207 : vector<8x128xf32>
    %209 = math.exp %208 : vector<8x128xf32>
    %cst_67 = arith.constant 1.000000e+00 : f32
    %210 = vector.broadcast %cst_67 : f32 to vector<8x128xf32>
    %211 = arith.addf %210, %209 : vector<8x128xf32>
    %212 = arith.divf %210, %211 : vector<8x128xf32>
    %213 = math.tanh %207 : vector<8x128xf32>
    %214 = arith.select %5, %213, %212 : vector<8x128xi1>, vector<8x128xf32>
    %215 = vector.extract_strided_slice %214 {offsets = [0, 0], sizes = [8, 32], strides = [1, 1]} : vector<8x128xf32> to vector<8x32xf32>
    %216 = vector.extract_strided_slice %214 {offsets = [0, 32], sizes = [8, 32], strides = [1, 1]} : vector<8x128xf32> to vector<8x32xf32>
    %217 = vector.extract_strided_slice %214 {offsets = [0, 64], sizes = [8, 32], strides = [1, 1]} : vector<8x128xf32> to vector<8x32xf32>
    %218 = vector.extract_strided_slice %214 {offsets = [0, 96], sizes = [8, 32], strides = [1, 1]} : vector<8x128xf32> to vector<8x32xf32>
    %219 = arith.mulf %216, %203 : vector<8x32xf32>
    %220 = arith.mulf %215, %217 : vector<8x32xf32>
    %221 = arith.addf %219, %220 : vector<8x32xf32>
    %222 = math.tanh %221 : vector<8x32xf32>
    %223 = arith.mulf %218, %222 : vector<8x32xf32>
    %c8_68 = arith.constant 8 : index
    %c0_69 = arith.constant 0 : index
    %224 = vector.load %arg10[%c8_68, %c0_69] : memref<64x128xf32, #tpu.memory_space<vmem>>, vector<8x128xf32>
    %225 = arith.truncf %223 : vector<8x32xf32> to vector<8x32xbf16>
    %cst_70 = arith.constant dense<0.000000e+00> : vector<8x128xf32>
    %226 = tpu.matmul %225, %193, %cst_70 {dimension_numbers = #tpu.dot_dimension_numbers<[1], [0], [0], [1], [0, 0, 1, 1], [], []>} : vector<8x32xbf16>, vector<32x128xbf16>, vector<8x128xf32> -> vector<8x128xf32>
    %227 = arith.addf %224, %226 : vector<8x128xf32>
    %228 = arith.negf %227 : vector<8x128xf32>
    %229 = math.exp %228 : vector<8x128xf32>
    %cst_71 = arith.constant 1.000000e+00 : f32
    %230 = vector.broadcast %cst_71 : f32 to vector<8x128xf32>
    %231 = arith.addf %230, %229 : vector<8x128xf32>
    %232 = arith.divf %230, %231 : vector<8x128xf32>
    %233 = math.tanh %227 : vector<8x128xf32>
    %234 = arith.select %5, %233, %232 : vector<8x128xi1>, vector<8x128xf32>
    %235 = vector.extract_strided_slice %234 {offsets = [0, 0], sizes = [8, 32], strides = [1, 1]} : vector<8x128xf32> to vector<8x32xf32>
    %236 = vector.extract_strided_slice %234 {offsets = [0, 32], sizes = [8, 32], strides = [1, 1]} : vector<8x128xf32> to vector<8x32xf32>
    %237 = vector.extract_strided_slice %234 {offsets = [0, 64], sizes = [8, 32], strides = [1, 1]} : vector<8x128xf32> to vector<8x32xf32>
    %238 = vector.extract_strided_slice %234 {offsets = [0, 96], sizes = [8, 32], strides = [1, 1]} : vector<8x128xf32> to vector<8x32xf32>
    %239 = arith.mulf %236, %221 : vector<8x32xf32>
    %240 = arith.mulf %235, %237 : vector<8x32xf32>
    %241 = arith.addf %239, %240 : vector<8x32xf32>
    %242 = math.tanh %241 : vector<8x32xf32>
    %243 = arith.mulf %238, %242 : vector<8x32xf32>
    %c16_72 = arith.constant 16 : index
    %c0_73 = arith.constant 0 : index
    %244 = vector.load %arg10[%c16_72, %c0_73] : memref<64x128xf32, #tpu.memory_space<vmem>>, vector<8x128xf32>
    %245 = arith.truncf %243 : vector<8x32xf32> to vector<8x32xbf16>
    %cst_74 = arith.constant dense<0.000000e+00> : vector<8x128xf32>
    %246 = tpu.matmul %245, %193, %cst_74 {dimension_numbers = #tpu.dot_dimension_numbers<[1], [0], [0], [1], [0, 0, 1, 1], [], []>} : vector<8x32xbf16>, vector<32x128xbf16>, vector<8x128xf32> -> vector<8x128xf32>
    %247 = arith.addf %244, %246 : vector<8x128xf32>
    %248 = arith.negf %247 : vector<8x128xf32>
    %249 = math.exp %248 : vector<8x128xf32>
    %cst_75 = arith.constant 1.000000e+00 : f32
    %250 = vector.broadcast %cst_75 : f32 to vector<8x128xf32>
    %251 = arith.addf %250, %249 : vector<8x128xf32>
    %252 = arith.divf %250, %251 : vector<8x128xf32>
    %253 = math.tanh %247 : vector<8x128xf32>
    %254 = arith.select %5, %253, %252 : vector<8x128xi1>, vector<8x128xf32>
    %255 = vector.extract_strided_slice %254 {offsets = [0, 0], sizes = [8, 32], strides = [1, 1]} : vector<8x128xf32> to vector<8x32xf32>
    %256 = vector.extract_strided_slice %254 {offsets = [0, 32], sizes = [8, 32], strides = [1, 1]} : vector<8x128xf32> to vector<8x32xf32>
    %257 = vector.extract_strided_slice %254 {offsets = [0, 64], sizes = [8, 32], strides = [1, 1]} : vector<8x128xf32> to vector<8x32xf32>
    %258 = vector.extract_strided_slice %254 {offsets = [0, 96], sizes = [8, 32], strides = [1, 1]} : vector<8x128xf32> to vector<8x32xf32>
    %259 = arith.mulf %256, %241 : vector<8x32xf32>
    %260 = arith.mulf %255, %257 : vector<8x32xf32>
    %261 = arith.addf %259, %260 : vector<8x32xf32>
    %262 = math.tanh %261 : vector<8x32xf32>
    %263 = arith.mulf %258, %262 : vector<8x32xf32>
    %c24_76 = arith.constant 24 : index
    %c0_77 = arith.constant 0 : index
    %264 = vector.load %arg10[%c24_76, %c0_77] : memref<64x128xf32, #tpu.memory_space<vmem>>, vector<8x128xf32>
    %265 = arith.truncf %263 : vector<8x32xf32> to vector<8x32xbf16>
    %cst_78 = arith.constant dense<0.000000e+00> : vector<8x128xf32>
    %266 = tpu.matmul %265, %193, %cst_78 {dimension_numbers = #tpu.dot_dimension_numbers<[1], [0], [0], [1], [0, 0, 1, 1], [], []>} : vector<8x32xbf16>, vector<32x128xbf16>, vector<8x128xf32> -> vector<8x128xf32>
    %267 = arith.addf %264, %266 : vector<8x128xf32>
    %268 = arith.negf %267 : vector<8x128xf32>
    %269 = math.exp %268 : vector<8x128xf32>
    %cst_79 = arith.constant 1.000000e+00 : f32
    %270 = vector.broadcast %cst_79 : f32 to vector<8x128xf32>
    %271 = arith.addf %270, %269 : vector<8x128xf32>
    %272 = arith.divf %270, %271 : vector<8x128xf32>
    %273 = math.tanh %267 : vector<8x128xf32>
    %274 = arith.select %5, %273, %272 : vector<8x128xi1>, vector<8x128xf32>
    %275 = vector.extract_strided_slice %274 {offsets = [0, 0], sizes = [8, 32], strides = [1, 1]} : vector<8x128xf32> to vector<8x32xf32>
    %276 = vector.extract_strided_slice %274 {offsets = [0, 32], sizes = [8, 32], strides = [1, 1]} : vector<8x128xf32> to vector<8x32xf32>
    %277 = vector.extract_strided_slice %274 {offsets = [0, 64], sizes = [8, 32], strides = [1, 1]} : vector<8x128xf32> to vector<8x32xf32>
    %278 = vector.extract_strided_slice %274 {offsets = [0, 96], sizes = [8, 32], strides = [1, 1]} : vector<8x128xf32> to vector<8x32xf32>
    %279 = arith.mulf %276, %261 : vector<8x32xf32>
    %280 = arith.mulf %275, %277 : vector<8x32xf32>
    %281 = arith.addf %279, %280 : vector<8x32xf32>
    %282 = math.tanh %281 : vector<8x32xf32>
    %283 = arith.mulf %278, %282 : vector<8x32xf32>
    %c32_80 = arith.constant 32 : index
    %c0_81 = arith.constant 0 : index
    %284 = vector.load %arg10[%c32_80, %c0_81] : memref<64x128xf32, #tpu.memory_space<vmem>>, vector<8x128xf32>
    %285 = arith.truncf %283 : vector<8x32xf32> to vector<8x32xbf16>
    %cst_82 = arith.constant dense<0.000000e+00> : vector<8x128xf32>
    %286 = tpu.matmul %285, %193, %cst_82 {dimension_numbers = #tpu.dot_dimension_numbers<[1], [0], [0], [1], [0, 0, 1, 1], [], []>} : vector<8x32xbf16>, vector<32x128xbf16>, vector<8x128xf32> -> vector<8x128xf32>
    %287 = arith.addf %284, %286 : vector<8x128xf32>
    %288 = arith.negf %287 : vector<8x128xf32>
    %289 = math.exp %288 : vector<8x128xf32>
    %cst_83 = arith.constant 1.000000e+00 : f32
    %290 = vector.broadcast %cst_83 : f32 to vector<8x128xf32>
    %291 = arith.addf %290, %289 : vector<8x128xf32>
    %292 = arith.divf %290, %291 : vector<8x128xf32>
    %293 = math.tanh %287 : vector<8x128xf32>
    %294 = arith.select %5, %293, %292 : vector<8x128xi1>, vector<8x128xf32>
    %295 = vector.extract_strided_slice %294 {offsets = [0, 0], sizes = [8, 32], strides = [1, 1]} : vector<8x128xf32> to vector<8x32xf32>
    %296 = vector.extract_strided_slice %294 {offsets = [0, 32], sizes = [8, 32], strides = [1, 1]} : vector<8x128xf32> to vector<8x32xf32>
    %297 = vector.extract_strided_slice %294 {offsets = [0, 64], sizes = [8, 32], strides = [1, 1]} : vector<8x128xf32> to vector<8x32xf32>
    %298 = vector.extract_strided_slice %294 {offsets = [0, 96], sizes = [8, 32], strides = [1, 1]} : vector<8x128xf32> to vector<8x32xf32>
    %299 = arith.mulf %296, %281 : vector<8x32xf32>
    %300 = arith.mulf %295, %297 : vector<8x32xf32>
    %301 = arith.addf %299, %300 : vector<8x32xf32>
    %302 = math.tanh %301 : vector<8x32xf32>
    %303 = arith.mulf %298, %302 : vector<8x32xf32>
    %c40_84 = arith.constant 40 : index
    %c0_85 = arith.constant 0 : index
    %304 = vector.load %arg10[%c40_84, %c0_85] : memref<64x128xf32, #tpu.memory_space<vmem>>, vector<8x128xf32>
    %305 = arith.truncf %303 : vector<8x32xf32> to vector<8x32xbf16>
    %cst_86 = arith.constant dense<0.000000e+00> : vector<8x128xf32>
    %306 = tpu.matmul %305, %193, %cst_86 {dimension_numbers = #tpu.dot_dimension_numbers<[1], [0], [0], [1], [0, 0, 1, 1], [], []>} : vector<8x32xbf16>, vector<32x128xbf16>, vector<8x128xf32> -> vector<8x128xf32>
    %307 = arith.addf %304, %306 : vector<8x128xf32>
    %308 = arith.negf %307 : vector<8x128xf32>
    %309 = math.exp %308 : vector<8x128xf32>
    %cst_87 = arith.constant 1.000000e+00 : f32
    %310 = vector.broadcast %cst_87 : f32 to vector<8x128xf32>
    %311 = arith.addf %310, %309 : vector<8x128xf32>
    %312 = arith.divf %310, %311 : vector<8x128xf32>
    %313 = math.tanh %307 : vector<8x128xf32>
    %314 = arith.select %5, %313, %312 : vector<8x128xi1>, vector<8x128xf32>
    %315 = vector.extract_strided_slice %314 {offsets = [0, 0], sizes = [8, 32], strides = [1, 1]} : vector<8x128xf32> to vector<8x32xf32>
    %316 = vector.extract_strided_slice %314 {offsets = [0, 32], sizes = [8, 32], strides = [1, 1]} : vector<8x128xf32> to vector<8x32xf32>
    %317 = vector.extract_strided_slice %314 {offsets = [0, 64], sizes = [8, 32], strides = [1, 1]} : vector<8x128xf32> to vector<8x32xf32>
    %318 = vector.extract_strided_slice %314 {offsets = [0, 96], sizes = [8, 32], strides = [1, 1]} : vector<8x128xf32> to vector<8x32xf32>
    %319 = arith.mulf %316, %301 : vector<8x32xf32>
    %320 = arith.mulf %315, %317 : vector<8x32xf32>
    %321 = arith.addf %319, %320 : vector<8x32xf32>
    %322 = math.tanh %321 : vector<8x32xf32>
    %323 = arith.mulf %318, %322 : vector<8x32xf32>
    %c48_88 = arith.constant 48 : index
    %c0_89 = arith.constant 0 : index
    %324 = vector.load %arg10[%c48_88, %c0_89] : memref<64x128xf32, #tpu.memory_space<vmem>>, vector<8x128xf32>
    %325 = arith.truncf %323 : vector<8x32xf32> to vector<8x32xbf16>
    %cst_90 = arith.constant dense<0.000000e+00> : vector<8x128xf32>
    %326 = tpu.matmul %325, %193, %cst_90 {dimension_numbers = #tpu.dot_dimension_numbers<[1], [0], [0], [1], [0, 0, 1, 1], [], []>} : vector<8x32xbf16>, vector<32x128xbf16>, vector<8x128xf32> -> vector<8x128xf32>
    %327 = arith.addf %324, %326 : vector<8x128xf32>
    %328 = arith.negf %327 : vector<8x128xf32>
    %329 = math.exp %328 : vector<8x128xf32>
    %cst_91 = arith.constant 1.000000e+00 : f32
    %330 = vector.broadcast %cst_91 : f32 to vector<8x128xf32>
    %331 = arith.addf %330, %329 : vector<8x128xf32>
    %332 = arith.divf %330, %331 : vector<8x128xf32>
    %333 = math.tanh %327 : vector<8x128xf32>
    %334 = arith.select %5, %333, %332 : vector<8x128xi1>, vector<8x128xf32>
    %335 = vector.extract_strided_slice %334 {offsets = [0, 0], sizes = [8, 32], strides = [1, 1]} : vector<8x128xf32> to vector<8x32xf32>
    %336 = vector.extract_strided_slice %334 {offsets = [0, 32], sizes = [8, 32], strides = [1, 1]} : vector<8x128xf32> to vector<8x32xf32>
    %337 = vector.extract_strided_slice %334 {offsets = [0, 64], sizes = [8, 32], strides = [1, 1]} : vector<8x128xf32> to vector<8x32xf32>
    %338 = vector.extract_strided_slice %334 {offsets = [0, 96], sizes = [8, 32], strides = [1, 1]} : vector<8x128xf32> to vector<8x32xf32>
    %339 = arith.mulf %336, %321 : vector<8x32xf32>
    %340 = arith.mulf %335, %337 : vector<8x32xf32>
    %341 = arith.addf %339, %340 : vector<8x32xf32>
    %342 = math.tanh %341 : vector<8x32xf32>
    %343 = arith.mulf %338, %342 : vector<8x32xf32>
    %c56_92 = arith.constant 56 : index
    %c0_93 = arith.constant 0 : index
    %344 = vector.load %arg10[%c56_92, %c0_93] : memref<64x128xf32, #tpu.memory_space<vmem>>, vector<8x128xf32>
    %345 = arith.truncf %343 : vector<8x32xf32> to vector<8x32xbf16>
    %cst_94 = arith.constant dense<0.000000e+00> : vector<8x128xf32>
    %346 = tpu.matmul %345, %193, %cst_94 {dimension_numbers = #tpu.dot_dimension_numbers<[1], [0], [0], [1], [0, 0, 1, 1], [], []>} : vector<8x32xbf16>, vector<32x128xbf16>, vector<8x128xf32> -> vector<8x128xf32>
    %347 = arith.addf %344, %346 : vector<8x128xf32>
    %348 = arith.negf %347 : vector<8x128xf32>
    %349 = math.exp %348 : vector<8x128xf32>
    %cst_95 = arith.constant 1.000000e+00 : f32
    %350 = vector.broadcast %cst_95 : f32 to vector<8x128xf32>
    %351 = arith.addf %350, %349 : vector<8x128xf32>
    %352 = arith.divf %350, %351 : vector<8x128xf32>
    %353 = math.tanh %347 : vector<8x128xf32>
    %354 = arith.select %5, %353, %352 : vector<8x128xi1>, vector<8x128xf32>
    %355 = vector.extract_strided_slice %354 {offsets = [0, 0], sizes = [8, 32], strides = [1, 1]} : vector<8x128xf32> to vector<8x32xf32>
    %356 = vector.extract_strided_slice %354 {offsets = [0, 32], sizes = [8, 32], strides = [1, 1]} : vector<8x128xf32> to vector<8x32xf32>
    %357 = vector.extract_strided_slice %354 {offsets = [0, 64], sizes = [8, 32], strides = [1, 1]} : vector<8x128xf32> to vector<8x32xf32>
    %358 = vector.extract_strided_slice %354 {offsets = [0, 96], sizes = [8, 32], strides = [1, 1]} : vector<8x128xf32> to vector<8x32xf32>
    %359 = arith.mulf %356, %341 : vector<8x32xf32>
    %360 = arith.mulf %355, %357 : vector<8x32xf32>
    %361 = arith.addf %359, %360 : vector<8x32xf32>
    %362 = math.tanh %361 : vector<8x32xf32>
    %363 = arith.mulf %358, %362 : vector<8x32xf32>
    %364 = arith.truncf %363 : vector<8x32xf32> to vector<8x32xbf16>
    %c0_96 = arith.constant 0 : index
    %c0_97 = arith.constant 0 : index
    %365 = vector.load %arg5[%c0_96, %c0_97] : memref<32x4xbf16, #tpu.memory_space<vmem>>, vector<32x4xbf16>
    %cst_98 = arith.constant dense<0.000000e+00> : vector<8x4xf32>
    %366 = tpu.matmul %364, %365, %cst_98 {dimension_numbers = #tpu.dot_dimension_numbers<[1], [0], [0], [1], [0, 0, 1, 1], [], []>} : vector<8x32xbf16>, vector<32x4xbf16>, vector<8x4xf32> -> vector<8x4xf32>
    %c0_99 = arith.constant 0 : index
    %c0_100 = arith.constant 0 : index
    %367 = vector.load %arg6[%c0_99, %c0_100] : memref<1x4xf32, #tpu.memory_space<vmem>>, vector<1x4xf32>
    %368 = vector.broadcast %367 : vector<1x4xf32> to vector<8x4xf32>
    %369 = arith.addf %366, %368 : vector<8x4xf32>
    %370 = math.tanh %369 : vector<8x4xf32>
    %cst_101 = arith.constant 1.000000e+00 : f32
    %371 = vector.broadcast %cst_101 : f32 to vector<8x4xf32>
    %372 = arith.mulf %371, %370 : vector<8x4xf32>
    %373 = vector.extract_strided_slice %372 {offsets = [0, 0], sizes = [2, 4], strides = [1, 1]} : vector<8x4xf32> to vector<2x4xf32>
    %c0_102 = arith.constant 0 : index
    %c0_103 = arith.constant 0 : index
    %374 = vector.load %arg7[%c0_102, %c0_103] : memref<2x4xf32, #tpu.memory_space<vmem>>, vector<2x4xf32>
    tpu.vector_store %arg7[%c0_102, %c0_103], %373 {strides = array<i32>} : memref<2x4xf32, #tpu.memory_space<vmem>>, vector<2x4xf32>,
    %375 = tpu.concatenate %188, %363 in 1 : vector<8x32xf32>, vector<8x32xf32> -> vector<8x64xf32>
    %376 = vector.extract_strided_slice %375 {offsets = [0, 0], sizes = [2, 64], strides = [1, 1]} : vector<8x64xf32> to vector<2x64xf32>
    %c0_104 = arith.constant 0 : index
    %c0_105 = arith.constant 0 : index
    %377 = vector.load %arg8[%c0_104, %c0_105] : memref<2x64xf32, #tpu.memory_space<vmem>>, vector<2x64xf32>
    tpu.vector_store %arg8[%c0_104, %c0_105], %376 {strides = array<i32>} : memref<2x64xf32, #tpu.memory_space<vmem>>, vector<2x64xf32>,
    %378 = tpu.concatenate %186, %361 in 1 : vector<8x32xf32>, vector<8x32xf32> -> vector<8x64xf32>
    %379 = vector.extract_strided_slice %378 {offsets = [0, 0], sizes = [2, 64], strides = [1, 1]} : vector<8x64xf32> to vector<2x64xf32>
    %c0_106 = arith.constant 0 : index
    %c0_107 = arith.constant 0 : index
    %380 = vector.load %arg9[%c0_106, %c0_107] : memref<2x64xf32, #tpu.memory_space<vmem>>, vector<2x64xf32>
    tpu.vector_store %arg9[%c0_106, %c0_107], %379 {strides = array<i32>} : memref<2x64xf32, #tpu.memory_space<vmem>>, vector<2x64xf32>,
    return
  }
}

</mosaic_0001>

<bundles_post_ra>
// kernel: recurrent_actor_prob_forward.1
= control target key start
LH: loop header
LB: loop body
LE: loop exit
PB: predicated region body
PF: predicated region fallthrough
CT: control target
= control target key end

     0   :  { %v2089_v1 = vmov 0.0   ;;  %vm69_vm0 = vcmask 130048   ;;  %vm2090_vm1 = vmmov 0   ;;  %vm169_vm2 = vcmask 261120   ;;  %s2597_s0 = inlined_call_operand.vmem [shape: f32[64,16], index: 0, kind: input, shape index: {}]   ;;  %s2598_s1 = inlined_call_operand.vmem [shape: f32[8,64], index: 1, kind: input, shape index: {}, may-alias: {1,2}]   ;;  %s2599_s2 = inlined_call_operand.vmem [shape: f32[8,64], index: 2, kind: input, shape index: {}, may-alias: {1,2}]   ;;  %s2600_s3 = inlined_call_operand.vmem [shape: bf16[2,64,128], index: 3, kind: input, shape index: {}]   ;;  %s2601_s4 = inlined_call_operand.vmem [shape: f32[2,1,128], index: 4, kind: input, shape index: {}]   ;;  %s2602_s5 = inlined_call_operand.vmem [shape: bf16[32,4], index: 5, kind: input, shape index: {}]   ;;  %s2603_s6 = inlined_call_operand.vmem [shape: f32[1,4], index: 6, kind: input, shape index: {}]   ;;  %s2604_s7 = inlined_call_operand.hbm [shape: f32[2,4], index: 7, kind: output, shape index: {0}]   ;;  %s2605_s8 = inlined_call_operand.vmem [shape: f32[2,64], index: 8, kind: output, shape index: {1}]   ;;  %s2606_s9 = inlined_call_operand.vmem [shape: f32[2,64], index: 9, kind: output, shape index: {2}]  }
   0x1   :  { %v1926_v0 = vld [vmem:[%s2600_s3] sm:$0xff]   ;;  %1772 = vmatprep.subr.bf16.mxu1 %v2089_v1  ;;  %v2152_v2 = vld [vmem:[%s2600_s3 + $0x10] sm:$0xff]   ;;  %v46_v4 = vld [vmem:[%s2597_s0 + $0x8] sm:$0xff]  ;;  %1776 = vmatprep.mubr.msk.bf16.mxu1 %vm2090_vm1, %v2089_v1 }
   0x2   :  { %1762 = vmatprep.subr.bf16.mxu0 %v1926_v0  ;;  %v45_v3 = vld [vmem:[%s2597_s0] sm:$0xff]  ;;  %v47_v5 = vld [vmem:[%s2597_s0 + $0x10] sm:$0xff]  ;;  %1773 = vmatpush3.bf16.msra.mxu1 %v2152_v2  ;;  %v48_v7 = vld [vmem:[%s2597_s0 + $0x18] sm:$0xff] }
   0x3   :  { %1763 = vmatpush3.bf16.msra.mxu0 %v1926_v0  ;;  %v53_v6 = vpack.c.bf16 %v46_v4, %v45_v3  ;;  %1774 = vmatprep.subr.bf16.mxu1 %v2089_v1  ;;  %v54_v8 = vpack.c.bf16 %v48_v7, %v47_v5  ;;  %v2171_v9 = vld [vmem:[%s2600_s3 + $0x18] sm:$0xff]   ;;  %v36_v10 = vld [vmem:[%s2598_s1] sm:$0xff] }
   0x4   :  { %1788 = vmatprep.subr.bf16.mxu0 %v2089_v1  ;;  %v2181_v11 = vpack.c.bf16 %v36_v10, %v36_v10 }
   0x5   :  { %1764 = vmatprep.mubr.msk.bf16.mxu0 %vm69_vm0, %v53_v6 }
   0x6   :  { %1765 = vmatmul.mubr.msk.bf16.vlgmr.msra.gmra.mrb[0].mxu0 %vm69_vm0, %v54_v8  ;;  %1775 = vmatpush3.bf16.msra.mxu1 %v2171_v9 }
   0x7   :  { %1789 = vmatpush3.bf16.msra.mxu0 %v2152_v2  ;;  %1780 = vmatprep.subr.bf16.mxu1 %v2089_v1 }
   0x8   :  { %1790 = vmatprep.subr.bf16.mxu0 %v2089_v1 }
   0x9   :  { %15 = vsyncpa [#allocation5], 0  ;;  %1777 = vmatmul.mubr.msk.bf16.vlgmr.msra.gmra.mrb[0].mxu1 %vm169_vm2, %v2181_v11  ;;  %v2200_v12 = vld [vmem:[%s2601_s4] ss:$0 sm:$0xff]  ;;  %v31_v25 = vlaneseq  ;;  %s2091_s26 = smov 64   ;;  %s2092_s29 = smov 32  }
   0xa   :  { %1781 = vmatpush3.bf16.msra.mxu1 %v2152_v2  ;;  %1784 = vmatprep.mubr.msk.bf16.mxu1 %vm2090_vm1, %v2089_v1  ;;  %v2217_v32 = vld [vmem:[%s2599_s2] sm:$0xff]  ;;  %v50_v62 = vld [vmem:[%s2597_s0 + $0x28] sm:$0xff]  ;;  %v51_v63 = vld [vmem:[%s2597_s0 + $0x30] sm:$0xff]  ;;  %s2093_s19 = smov 96   ;;  %vm1608_vm6 = vcmask 517120   ;;  %vm1601_vm7 = vcmask 25600  }
   0xb   :  { %1782 = vmatprep.subr.bf16.mxu1 %v2089_v1  ;;  %1791 = vmatpush3.bf16.msra.mxu0 %v2171_v9  ;;  %v32_v27 = vand.u32 127, %v31_v25  ;;  %v49_v61 = vld [vmem:[%s2597_s0 + $0x20] sm:$0xff]  ;;  %v52_v3 = vld [vmem:[%s2597_s0 + $0x38] sm:$0xff]  ;;  %v1934_v28 = vld [vmem:[%s2602_s5 + $0x8] sm:$0xff]  }
   0xc   :  { %1804 = vmatprep.subr.bf16.mxu0 %v2089_v1  ;;  %v55_v0 = vpack.c.bf16 %v50_v62, %v49_v61  ;;  %v56_v4 = vpack.c.bf16 %v52_v3, %v51_v63 }
   0xd   :  { %vm33_vm3 = vcmp.ge.s32.totalorder %v32_v27, 64  ;;  %vm34_vm4 = vcmp.lt.s32.totalorder %v32_v27, 96 }
   0xe   :  { %1783 = vmatpush3.bf16.msra.mxu1 %v2171_v9  ;;  %vm2207_vm5 = vmand %vm33_vm3, %vm34_vm4  ;;  %1768 = vmatprep.mubr.msk.bf16.mxu0 %vm69_vm0, %v55_v0 }
   0xf   :  { %1796 = vmatprep.subr.bf16.mxu1 %v2089_v1  ;;  %1769 = vmatmul.mubr.msk.bf16.gmra.mrb[4].mxu0 %vm69_vm0, %v56_v4 }
  0x10   :  { %1792 = vmatprep.mubr.msk.bf16.mxu0 %vm2090_vm1, %v2089_v1 }
  0xd9   :  { %v2202_v13 = vpop.f32.mrb[0].mxu0 }
  0xda   :  { %v116_v14 = vpop.f32.mrb[1].mxu0 }
  0xdb   :  { %v117_v15 = vadd.f32 %v2200_v12, %v116_v14  ;;  %v2205_v16 = vpop.f32.mrb[2].mxu0 }
  0xdc   :  { %v119_v17 = vpop.f32.mrb[3].mxu0  ;;  %v207_v18 = vpop.f32.mrb[0].mxu1 }
  0xdd   :  { %v213_v19 = vadd.f32 %v207_v18, %v117_v15  ;;  %v1778_v20 = vpop.f32.mrb[1].mxu1  ;;  %v120_v44 = vadd.f32 %v2200_v12, %v119_v17 }
  0xde   :  { %v210_v21 = vpop.f32.mrb[2].mxu1 }
  0xdf   :  { %v1647_v22 = vmul.f32 -1.442695, %v213_v19  ;;  %v1779_v23 = vpop.f32.mrb[3].mxu1 }
  0xe1   :  { %1935 = vpow2.f32 %v1647_v22 }
  0xe2   :  { %1937 = vtanh.f32 %v213_v19  ;;  %v2262_v10 = vpop.f32.mrb[4].mxu0  ;;  %v125_v19 = vadd.f32 %v2202_v13, %v2200_v12 }
  0xe3   :  { %v2264_v14 = vpop.f32.mrb[5].mxu0 }
  0xe4   :  { %v2266_v15 = vpop.f32.mrb[6].mxu0  ;;  %v133_v0 = vadd.f32 %v2200_v12, %v2264_v14 }
  0xe5   :  { %v2268_v17 = vpop.f32.mrb[7].mxu0 }
  0xeb   :  { %v1936_v24 = vpop.eup %1935 }
  0xec   :  { %v217_v26 = vadd.f32 1.0, %v1936_v24  ;;  %v1938_v29 = vpop.eup %1937 }
  0xee   :  { %1939 = vrcp.f32 %v217_v26 }
  0xf8   :  { %v1940_v30 = vpop.eup %1939 }
  0xf9   :  { %v221_v31 = vsel %vm2207_vm5, %v1938_v29, %v1940_v30 }
  0xfa   :  { %228 = vrot.lane.b32.xlu0 %v221_v31, %s2091_s26 }
  0xfe   :  { %223 = vrot.lane.b32.xlu0 %v2217_v32, %s2092_s29 }
 0x16c   :  { %v229_v33 = vpop.permute.xlu0 %228 }
 0x16d   :  { %v231_v34 = vmul.f32 %v229_v33, %v221_v31 }
 0x16f   :  { %233 = vrot.lane.b32.xlu1 %v231_v34, %s2092_s29 }
 0x170   :  { %v224_v35 = vpop.permute.xlu0 %223 }
 0x171   :  { %v226_v36 = vmul.f32 %v224_v35, %v221_v31 }
 0x1e1   :  { %v234_v37 = vpop.permute.xlu1 %233 }
 0x1e2   :  { %v236_v38 = vadd.f32 %v234_v37, %v226_v36 }
 0x1e4   :  { %1941 = vtanh.f32 %v236_v38 }
 0x1ee   :  { %v1942_v39 = vpop.eup %1941 }
 0x1ef   :  { %239 = vrot.lane.b32.xlu1 %v1942_v39, %s2091_s26 }
 0x261   :  { %v240_v40 = vpop.permute.xlu1 %239 }
 0x262   :  { %v2223_v41 = vmul.f32 %v240_v40, %v221_v31 }
 0x264   :  { %v249_v42 = vpack.c.bf16 %v2223_v41, %v2223_v41 }
 0x266   :  { %251 = vrot.lane.b32.xlu0 %v249_v42, %s2092_s29 }
 0x2d8   :  { %v252_v43 = vpop.permute.xlu0 %251 }
 0x2d9   :  { %1785 = vmatmul.mubr.msk.bf16.vlgmr.msra.gmra.mrb[4].mxu1 %vm169_vm2, %v252_v43  ;;  %v128_v43 = vadd.f32 %v2205_v16, %v2200_v12 }
 0x2da   :  { %1797 = vmatpush3.bf16.msra.mxu1 %v2152_v2  ;;  %1800 = vmatprep.mubr.msk.bf16.mxu1 %vm2090_vm1, %v2089_v1 }
 0x2db   :  { %1798 = vmatprep.subr.bf16.mxu1 %v2089_v1 }
 0x2de   :  { %1799 = vmatpush3.bf16.msra.mxu1 %v2171_v9 }
 0x2df   :  { %1812 = vmatprep.subr.bf16.mxu1 %v2089_v1 }
 0x3ac   :  { %v290_v45 = vpop.f32.mrb[4].mxu1 }
 0x3ad   :  { %v296_v46 = vadd.f32 %v290_v45, %v120_v44  ;;  %v1786_v47 = vpop.f32.mrb[5].mxu1 }
 0x3ae   :  { %v293_v48 = vpop.f32.mrb[6].mxu1 }
 0x3af   :  { %v1649_v49 = vmul.f32 -1.442695, %v296_v46  ;;  %v1787_v50 = vpop.f32.mrb[7].mxu1 }
 0x3b1   :  { %1943 = vpow2.f32 %v1649_v49 }
 0x3b2   :  { %1945 = vtanh.f32 %v296_v46 }
 0x3bb   :  { %v1944_v51 = vpop.eup %1943 }
 0x3bc   :  { %v300_v52 = vadd.f32 1.0, %v1944_v51  ;;  %v1946_v53 = vpop.eup %1945 }
 0x3be   :  { %1947 = vrcp.f32 %v300_v52 }
 0x3c8   :  { %v1948_v54 = vpop.eup %1947 }
 0x3c9   :  { %v304_v55 = vsel %vm2207_vm5, %v1946_v53, %v1948_v54 }
 0x3ca   :  { %307 = vrot.lane.b32.xlu1 %v304_v55, %s2091_s26  ;;  %v305_v58 = vmul.f32 %v304_v55, %v236_v38 }
 0x43c   :  { %v308_v56 = vpop.permute.xlu1 %307 }
 0x43d   :  { %v310_v57 = vmul.f32 %v308_v56, %v304_v55 }
 0x43f   :  { %312 = vrot.lane.b32.xlu0 %v310_v57, %s2092_s29 }
 0x4b1   :  { %v313_v59 = vpop.permute.xlu0 %312 }
 0x4b2   :  { %v315_v60 = vadd.f32 %v313_v59, %v305_v58 }
 0x4b4   :  { %1949 = vtanh.f32 %v315_v60 }
 0x4be   :  { %v1950_v5 = vpop.eup %1949 }
 0x4bf   :  { %318 = vrot.lane.b32.xlu1 %v1950_v5, %s2091_s26 }
 0x531   :  { %v319_v6 = vpop.permute.xlu1 %318 }
 0x532   :  { %v2257_v7 = vmul.f32 %v319_v6, %v304_v55 }
 0x534   :  { %v328_v8 = vpack.c.bf16 %v2257_v7, %v2257_v7 }
 0x536   :  { %330 = vrot.lane.b32.xlu0 %v328_v8, %s2092_s29 }
 0x5a8   :  { %v331_v18 = vpop.permute.xlu0 %330 }
 0x5a9   :  { %1793 = vmatmul.mubr.msk.bf16.vlgmr.msra.gmra.mrb[8].mxu0 %vm169_vm2, %v331_v18 }
 0x5aa   :  { %1805 = vmatpush3.bf16.msra.mxu0 %v2152_v2  ;;  %1808 = vmatprep.mubr.msk.bf16.mxu0 %vm2090_vm1, %v2089_v1 }
 0x5ab   :  { %1806 = vmatprep.subr.bf16.mxu0 %v2089_v1 }
 0x5ae   :  { %1807 = vmatpush3.bf16.msra.mxu0 %v2171_v9 }
 0x5af   :  { %1820 = vmatprep.subr.bf16.mxu0 %v2089_v1 }
 0x67c   :  { %v369_v20 = vpop.f32.mrb[8].mxu0 }
 0x67d   :  { %v375_v21 = vadd.f32 %v369_v20, %v125_v19  ;;  %v1794_v22 = vpop.f32.mrb[9].mxu0 }
 0x67e   :  { %v372_v23 = vpop.f32.mrb[10].mxu0 }
 0x67f   :  { %v1651_v24 = vmul.f32 -1.442695, %v375_v21  ;;  %v1795_v25 = vpop.f32.mrb[11].mxu0 }
 0x681   :  { %1951 = vpow2.f32 %v1651_v24 }
 0x682   :  { %1953 = vtanh.f32 %v375_v21 }
 0x68b   :  { %v1952_v26 = vpop.eup %1951 }
 0x68c   :  { %v379_v27 = vadd.f32 1.0, %v1952_v26  ;;  %v1954_v29 = vpop.eup %1953 }
 0x68e   :  { %1955 = vrcp.f32 %v379_v27 }
 0x698   :  { %v1956_v30 = vpop.eup %1955 }
 0x699   :  { %v383_v31 = vsel %vm2207_vm5, %v1954_v29, %v1956_v30 }
 0x69a   :  { %386 = vrot.lane.b32.xlu1 %v383_v31, %s2091_s26  ;;  %v384_v34 = vmul.f32 %v383_v31, %v315_v60 }
 0x70c   :  { %v387_v33 = vpop.permute.xlu1 %386 }
 0x70d   :  { %v389_v13 = vmul.f32 %v387_v33, %v383_v31 }
 0x70f   :  { %391 = vrot.lane.b32.xlu0 %v389_v13, %s2092_s29 }
 0x781   :  { %v392_v35 = vpop.permute.xlu0 %391 }
 0x782   :  { %v394_v36 = vadd.f32 %v392_v35, %v384_v34  ;;  %v136_v34 = vadd.f32 %v2200_v12, %v2268_v17 }
 0x784   :  { %1957 = vtanh.f32 %v394_v36 }
 0x78e   :  { %v1958_v37 = vpop.eup %1957 }
 0x78f   :  { %397 = vrot.lane.b32.xlu1 %v1958_v37, %s2091_s26 }
 0x801   :  { %v398_v38 = vpop.permute.xlu1 %397 }
 0x802   :  { %v2284_v39 = vmul.f32 %v398_v38, %v383_v31 }
 0x804   :  { %v407_v40 = vpack.c.bf16 %v2284_v39, %v2284_v39 }
 0x806   :  { %409 = vrot.lane.b32.xlu0 %v407_v40, %s2092_s29 }
 0x878   :  { %v410_v42 = vpop.permute.xlu0 %409 }
 0x879   :  { %1801 = vmatmul.mubr.msk.bf16.vlgmr.msra.gmra.mrb[8].mxu1 %vm169_vm2, %v410_v42 }
 0x87a   :  { %1813 = vmatpush3.bf16.msra.mxu1 %v2152_v2  ;;  %1816 = vmatprep.mubr.msk.bf16.mxu1 %vm2090_vm1, %v2089_v1 }
 0x87b   :  { %1814 = vmatprep.subr.bf16.mxu1 %v2089_v1 }
 0x87e   :  { %1815 = vmatpush3.bf16.msra.mxu1 %v2171_v9 }
 0x87f   :  { %1828 = vmatprep.subr.bf16.mxu1 %v2089_v1 }
 0x94c   :  { %v448_v44 = vpop.f32.mrb[8].mxu1 }
 0x94d   :  { %v454_v45 = vadd.f32 %v448_v44, %v128_v43  ;;  %v1802_v46 = vpop.f32.mrb[9].mxu1 }
 0x94e   :  { %v451_v47 = vpop.f32.mrb[10].mxu1 }
 0x94f   :  { %v1653_v48 = vmul.f32 -1.442695, %v454_v45  ;;  %v1803_v49 = vpop.f32.mrb[11].mxu1 }
 0x951   :  { %1959 = vpow2.f32 %v1653_v48 }
 0x952   :  { %1961 = vtanh.f32 %v454_v45 }
 0x95b   :  { %v1960_v50 = vpop.eup %1959 }
 0x95c   :  { %v458_v51 = vadd.f32 1.0, %v1960_v50  ;;  %v1962_v52 = vpop.eup %1961 }
 0x95e   :  { %1963 = vrcp.f32 %v458_v51 }
 0x968   :  { %v1964_v53 = vpop.eup %1963 }
 0x969   :  { %v462_v54 = vsel %vm2207_vm5, %v1962_v52, %v1964_v53 }
 0x96a   :  { %465 = vrot.lane.b32.xlu1 %v462_v54, %s2091_s26  ;;  %v463_v56 = vmul.f32 %v462_v54, %v394_v36 }
 0x9dc   :  { %v466_v55 = vpop.permute.xlu1 %465 }
 0x9dd   :  { %v468_v16 = vmul.f32 %v466_v55, %v462_v54  ;;  %v141_v55 = vadd.f32 %v2262_v10, %v2200_v12 }
 0x9df   :  { %470 = vrot.lane.b32.xlu0 %v468_v16, %s2092_s29 }
 0xa51   :  { %v471_v57 = vpop.permute.xlu0 %470 }
 0xa52   :  { %v473_v58 = vadd.f32 %v471_v57, %v463_v56 }
 0xa54   :  { %1965 = vtanh.f32 %v473_v58 }
 0xa5e   :  { %v1966_v59 = vpop.eup %1965 }
 0xa5f   :  { %476 = vrot.lane.b32.xlu1 %v1966_v59, %s2091_s26 }
 0xad1   :  { %v477_v60 = vpop.permute.xlu1 %476 }
 0xad2   :  { %v2303_v61 = vmul.f32 %v477_v60, %v462_v54 }
 0xad4   :  { %v486_v62 = vpack.c.bf16 %v2303_v61, %v2303_v61 }
 0xad6   :  { %488 = vrot.lane.b32.xlu0 %v486_v62, %s2092_s29 }
 0xb48   :  { %v489_v63 = vpop.permute.xlu0 %488 }
 0xb49   :  { %1809 = vmatmul.mubr.msk.bf16.vlgmr.msra.gmra.mrb[12].mxu0 %vm169_vm2, %v489_v63 }
 0xb4a   :  { %1821 = vmatpush3.bf16.msra.mxu0 %v2152_v2  ;;  %1824 = vmatprep.mubr.msk.bf16.mxu0 %vm2090_vm1, %v2089_v1 }
 0xb4b   :  { %1822 = vmatprep.subr.bf16.mxu0 %v2089_v1 }
 0xb4e   :  { %1823 = vmatpush3.bf16.msra.mxu0 %v2171_v9 }
 0xc1c   :  { %v527_v3 = vpop.f32.mrb[12].mxu0 }
 0xc1d   :  { %v533_v4 = vadd.f32 %v527_v3, %v133_v0  ;;  %v1810_v5 = vpop.f32.mrb[13].mxu0 }
 0xc1e   :  { %v530_v6 = vpop.f32.mrb[14].mxu0 }
 0xc1f   :  { %v1655_v8 = vmul.f32 -1.442695, %v533_v4  ;;  %v1811_v18 = vpop.f32.mrb[15].mxu0 }
 0xc21   :  { %1967 = vpow2.f32 %v1655_v8 }
 0xc22   :  { %1969 = vtanh.f32 %v533_v4 }
 0xc2b   :  { %v1968_v19 = vpop.eup %1967 }
 0xc2c   :  { %v537_v20 = vadd.f32 1.0, %v1968_v19  ;;  %v1970_v21 = vpop.eup %1969 }
 0xc2e   :  { %1971 = vrcp.f32 %v537_v20 }
 0xc38   :  { %v1972_v22 = vpop.eup %1971 }
 0xc39   :  { %v541_v23 = vsel %vm2207_vm5, %v1970_v21, %v1972_v22  ;;  %v1929_v21 = vld [vmem:[%s2600_s3 + $0x20] sm:$0xff]  }
 0xc3a   :  { %544 = vrot.lane.b32.xlu1 %v541_v23, %s2091_s26  ;;  %v542_v25 = vmul.f32 %v541_v23, %v473_v58  ;;  %1836 = vmatprep.subr.bf16.mxu0 %v1929_v21 }
 0xcac   :  { %v545_v24 = vpop.permute.xlu1 %544 }
 0xcad   :  { %v547_v14 = vmul.f32 %v545_v24, %v541_v23 }
 0xcaf   :  { %549 = vrot.lane.b32.xlu0 %v547_v14, %s2092_s29 }
 0xd21   :  { %v550_v26 = vpop.permute.xlu0 %549 }
 0xd22   :  { %v552_v27 = vadd.f32 %v550_v26, %v542_v25 }
 0xd24   :  { %1973 = vtanh.f32 %v552_v27 }
 0xd2e   :  { %v1974_v29 = vpop.eup %1973 }
 0xd2f   :  { %555 = vrot.lane.b32.xlu1 %v1974_v29, %s2091_s26 }
 0xda1   :  { %v556_v30 = vpop.permute.xlu1 %555 }
 0xda2   :  { %v2321_v31 = vmul.f32 %v556_v30, %v541_v23  ;;  %v2386_v30 = vld [vmem:[%s2600_s3 + $0x30] sm:$0xff]  }
 0xda4   :  { %v565_v33 = vpack.c.bf16 %v2321_v31, %v2321_v31 }
 0xda6   :  { %567 = vrot.lane.b32.xlu0 %v565_v33, %s2092_s29  ;;  %v2394_v33 = vld [vmem:[%s2600_s3 + $0x38] sm:$0xff]  }
 0xe18   :  { %v568_v13 = vpop.permute.xlu0 %567 }
 0xe19   :  { %1817 = vmatmul.mubr.msk.bf16.vlgmr.msra.gmra.mrb[12].mxu1 %vm169_vm2, %v568_v13 }
 0xe1a   :  { %1829 = vmatpush3.bf16.msra.mxu1 %v2152_v2  ;;  %1832 = vmatprep.mubr.msk.bf16.mxu1 %vm2090_vm1, %v2089_v1 }
 0xe1b   :  { %1830 = vmatprep.subr.bf16.mxu1 %v2089_v1 }
 0xe1e   :  { %1831 = vmatpush3.bf16.msra.mxu1 %v2171_v9 }
 0xe1f   :  { %1848 = vmatprep.subr.bf16.mxu1 %v2089_v1 }
 0xeec   :  { %v606_v35 = vpop.f32.mrb[12].mxu1 }
 0xeed   :  { %v612_v36 = vadd.f32 %v606_v35, %v136_v34  ;;  %v1818_v37 = vpop.f32.mrb[13].mxu1 }
 0xeee   :  { %v609_v38 = vpop.f32.mrb[14].mxu1 }
 0xeef   :  { %v1657_v40 = vmul.f32 -1.442695, %v612_v36  ;;  %v1819_v42 = vpop.f32.mrb[15].mxu1 }
 0xef1   :  { %1975 = vpow2.f32 %v1657_v40  ;;  %v144_v40 = vadd.f32 %v2266_v15, %v2200_v12 }
 0xef2   :  { %1977 = vtanh.f32 %v612_v36 }
 0xefb   :  { %v1976_v2 = vpop.eup %1975 }
 0xefc   :  { %v616_v43 = vadd.f32 1.0, %v1976_v2  ;;  %v1978_v44 = vpop.eup %1977 }
 0xefe   :  { %1979 = vrcp.f32 %v616_v43 }
 0xf08   :  { %v1980_v45 = vpop.eup %1979 }
 0xf09   :  { %v620_v9 = vsel %vm2207_vm5, %v1978_v44, %v1980_v45 }
 0xf0a   :  { %623 = vrot.lane.b32.xlu1 %v620_v9, %s2091_s26  ;;  %v621_v47 = vmul.f32 %v620_v9, %v552_v27 }
 0xf7c   :  { %v624_v46 = vpop.permute.xlu1 %623 }
 0xf7d   :  { %v626_v17 = vmul.f32 %v624_v46, %v620_v9 }
 0xf7f   :  { %628 = vrot.lane.b32.xlu0 %v626_v17, %s2092_s29 }
 0xff1   :  { %v629_v48 = vpop.permute.xlu0 %628 }
 0xff2   :  { %v631_v49 = vadd.f32 %v629_v48, %v621_v47 }
 0xff4   :  { %1981 = vtanh.f32 %v631_v49 }
 0xffe   :  { %v1982_v50 = vpop.eup %1981 }
 0xfff   :  { %634 = vrot.lane.b32.xlu1 %v1982_v50, %s2091_s26 }
0x1071   :  { %v635_v51 = vpop.permute.xlu1 %634 }
0x1072   :  { %v2340_v52 = vmul.f32 %v635_v51, %v620_v9  ;;  %v2423_v9 = vld [vmem:[%s2601_s4 + $0x1] ss:$0 sm:$0xff] }
0x1074   :  { %v644_v53 = vpack.c.bf16 %v2340_v52, %v2340_v52 }
0x1076   :  { %646 = vrot.lane.b32.xlu0 %v644_v53, %s2092_s29 }
0x10e8   :  { %v647_v54 = vpop.permute.xlu0 %646 }
0x10e9   :  { %1825 = vmatmul.mubr.msk.bf16.vlgmr.msra.gmra.mrb[16].mxu0 %vm169_vm2, %v647_v54 }
0x10ea   :  { %1837 = vmatpush3.bf16.msra.mxu0 %v1929_v21 }
0x11bc   :  { %v685_v16 = vpop.f32.mrb[16].mxu0 }
0x11bd   :  { %v691_v56 = vadd.f32 %v685_v16, %v141_v55  ;;  %v1826_v57 = vpop.f32.mrb[17].mxu0 }
0x11be   :  { %v688_v58 = vpop.f32.mrb[18].mxu0 }
0x11bf   :  { %v1659_v59 = vmul.f32 -1.442695, %v691_v56  ;;  %v1827_v60 = vpop.f32.mrb[19].mxu0 }
0x11c1   :  { %1983 = vpow2.f32 %v1659_v59 }
0x11c2   :  { %1985 = vtanh.f32 %v691_v56 }
0x11cb   :  { %v1984_v62 = vpop.eup %1983 }
0x11cc   :  { %v695_v63 = vadd.f32 1.0, %v1984_v62  ;;  %v1986_v0 = vpop.eup %1985 }
0x11ce   :  { %1987 = vrcp.f32 %v695_v63 }
0x11d8   :  { %v1988_v3 = vpop.eup %1987 }
0x11d9   :  { %v699_v4 = vsel %vm2207_vm5, %v1986_v0, %v1988_v3 }
0x11da   :  { %702 = vrot.lane.b32.xlu1 %v699_v4, %s2091_s26  ;;  %v700_v6 = vmul.f32 %v699_v4, %v631_v49 }
0x124c   :  { %v703_v5 = vpop.permute.xlu1 %702 }
0x124d   :  { %v705_v10 = vmul.f32 %v703_v5, %v699_v4 }
0x124f   :  { %707 = vrot.lane.b32.xlu0 %v705_v10, %s2092_s29 }
0x1253   :  { %244 = vrot.lane.b32.xlu0 %v2223_v41, %s2092_s29  ;;  %v1930_v41 = vld [vmem:[%s2600_s3 + $0x28] sm:$0xff]  }
0x1254   :  { %1838 = vmatprep.subr.bf16.mxu0 %v1930_v41 }
0x1255   :  { %1839 = vmatpush3.bf16.msra.mxu0 %v1930_v41 }
0x1256   :  { %1864 = vmatprep.subr.bf16.mxu0 %v2089_v1 }
0x1257   :  { %402 = vrot.lane.b32.xlu0 %v2284_v39, %s2092_s29 }
0x12c1   :  { %v708_v8 = vpop.permute.xlu0 %707 }
0x12c2   :  { %v2356_v18 = vadd.f32 %v708_v8, %v700_v6 }
0x12c4   :  { %1989 = vtanh.f32 %v2356_v18 }
0x12c5   :  { %v245_v19 = vpop.permute.xlu0 %244 }
0x12c6   :  { %247 = vst.msk [vmem:[#allocation3] sm:$0xff] %vm169_vm2, %v245_v19 }
0x12c9   :  { %v403_v20 = vpop.permute.xlu0 %402 }
0x12ca   :  { %405 = vst.msk [vmem:[#allocation3 + $0x10] sm:$0xff] %vm169_vm2, %v403_v20 }
0x12ce   :  { %v1990_v39 = vpop.eup %1989 }
0x12cf   :  { %713 = vrot.lane.b32.xlu1 %v1990_v39, %s2091_s26 }
0x12d3   :  { %323 = vrot.lane.b32.xlu1 %v2257_v7, %s2092_s29  ;;  %v812_v7 = vld [vmem:[#allocation3] sm:$0xff] }
0x12d7   :  { %481 = vrot.lane.b32.xlu1 %v2303_v61, %s2092_s29 }
0x12db   :  { %929 = vrot.lane.b32.xlu1 %v2181_v11, %s2093_s19  ;;  %v814_v11 = vld [vmem:[#allocation3 + $0x10] sm:$0xff] }
0x1341   :  { %v714_v22 = vpop.permute.xlu1 %713 }
0x1342   :  { %v2375_v23 = vmul.f32 %v714_v22, %v699_v4 }
0x1344   :  { %v723_v24 = vpack.c.bf16 %v2375_v23, %v2375_v23 }
0x1345   :  { %v324_v14 = vpop.permute.xlu1 %323 }
0x1346   :  { %326 = vst.msk [vmem:[#allocation3 + $0x8] sm:$0xff] %vm169_vm2, %v324_v14  ;;  %725 = vrot.lane.b32.xlu0 %v723_v24, %s2092_s29 }
0x1349   :  { %v482_v25 = vpop.permute.xlu1 %481 }
0x134a   :  { %484 = vst.msk [vmem:[#allocation3 + $0x18] sm:$0xff] %vm169_vm2, %v482_v25 }
0x134d   :  { %v813_v61 = vld [vmem:[#allocation3 + $0x8] sm:$0xff]  ;;  %v930_v34 = vpop.permute.xlu1 %929 }
0x134e   :  { %v820_v26 = vpack.c.bf16 %v813_v61, %v812_v7 }
0x1350   :  { %1840 = vmatprep.mubr.msk.bf16.mxu0 %vm169_vm2, %v820_v26 }
0x1351   :  { %v815_v27 = vld [vmem:[#allocation3 + $0x18] sm:$0xff] }
0x1352   :  { %v821_v29 = vpack.c.bf16 %v815_v27, %v814_v11 }
0x1354   :  { %1841 = vmatmul.mubr.msk.bf16.vlgmr.msra.gmra.mrb[20].mxu0 %vm169_vm2, %v821_v29 }
0x1355   :  { %1865 = vmatpush3.bf16.msra.mxu0 %v2386_v30 }
0x1356   :  { %1866 = vmatprep.subr.bf16.mxu0 %v2089_v1 }
0x1359   :  { %1867 = vmatpush3.bf16.msra.mxu0 %v2394_v33 }
0x135a   :  { %1880 = vmatprep.subr.bf16.mxu0 %v2089_v1 }
0x13b8   :  { %v726_v13 = vpop.permute.xlu0 %725 }
0x13b9   :  { %1833 = vmatmul.mubr.msk.bf16.vlgmr.msra.gmra.mrb[16].mxu1 %vm169_vm2, %v726_v13 }
0x13ba   :  { %1849 = vmatpush3.bf16.msra.mxu1 %v2386_v30  ;;  %1852 = vmatprep.mubr.msk.bf16.mxu1 %vm2090_vm1, %v2089_v1 }
0x13bb   :  { %1850 = vmatprep.subr.bf16.mxu1 %v2089_v1 }
0x13be   :  { %1851 = vmatpush3.bf16.msra.mxu1 %v2394_v33 }
0x13bf   :  { %1856 = vmatprep.subr.bf16.mxu1 %v2089_v1 }
0x13c1   :  { %1853 = vmatmul.mubr.msk.bf16.vlgmr.msra.gmra.mrb[20].mxu1 %vm169_vm2, %v930_v34 }
0x13c2   :  { %1857 = vmatpush3.bf16.msra.mxu1 %v2386_v30  ;;  %1860 = vmatprep.mubr.msk.bf16.mxu1 %vm2090_vm1, %v2089_v1 }
0x13c3   :  { %1858 = vmatprep.subr.bf16.mxu1 %v2089_v1 }
0x13c6   :  { %1859 = vmatpush3.bf16.msra.mxu1 %v2394_v33 }
0x13c7   :  { %1872 = vmatprep.subr.bf16.mxu1 %v2089_v1 }
0x1427   :  { %v2412_v35 = vpop.f32.mrb[20].mxu0 }
0x1428   :  { %v888_v36 = vpop.f32.mrb[21].mxu0 }
0x1429   :  { %v2414_v37 = vpop.f32.mrb[22].mxu0  ;;  %v889_v46 = vadd.f32 %v2423_v9, %v888_v36 }
0x142a   :  { %v2416_v38 = vpop.f32.mrb[23].mxu0 }
0x142b   :  { %v892_v25 = vadd.f32 %v2423_v9, %v2416_v38 }
0x148c   :  { %v764_v42 = vpop.f32.mrb[16].mxu1 }
0x148d   :  { %v770_v2 = vadd.f32 %v764_v42, %v144_v40  ;;  %v1834_v43 = vpop.f32.mrb[17].mxu1 }
0x148e   :  { %v767_v44 = vpop.f32.mrb[18].mxu1 }
0x148f   :  { %v1835_v45 = vpop.f32.mrb[19].mxu1  ;;  %v1661_v57 = vmul.f32 -1.442695, %v770_v2 }
0x1494   :  { %v980_v17 = vpop.f32.mrb[20].mxu1 }
0x1495   :  { %v986_v47 = vadd.f32 %v980_v17, %v889_v46  ;;  %v1854_v48 = vpop.f32.mrb[21].mxu1 }
0x1496   :  { %v983_v49 = vpop.f32.mrb[22].mxu1 }
0x1497   :  { %v1681_v50 = vmul.f32 -1.442695, %v986_v47  ;;  %v1855_v51 = vpop.f32.mrb[23].mxu1 }
0x1499   :  { %1991 = vpow2.f32 %v1681_v50 }
0x149a   :  { %1993 = vtanh.f32 %v986_v47 }
0x14a3   :  { %v1992_v12 = vpop.eup %1991 }
0x14a4   :  { %v990_v15 = vadd.f32 1.0, %v1992_v12  ;;  %v1994_v53 = vpop.eup %1993 }
0x14a6   :  { %1995 = vrcp.f32 %v990_v15 }
0x14a7   :  { %1997 = vpow2.f32 %v1661_v57 }
0x14b0   :  { %v1996_v54 = vpop.eup %1995 }
0x14b1   :  { %v994_v55 = vsel %vm2207_vm5, %v1994_v53, %v1996_v54  ;;  %v1998_v58 = vpop.eup %1997 }
0x14b2   :  { %997 = vrot.lane.b32.xlu0 %v994_v55, %s2091_s26  ;;  %v995_v59 = vmul.f32 %v994_v55, %v2217_v32  ;;  %v774_v60 = vadd.f32 1.0, %v1998_v58  ;;  %v897_v58 = vadd.f32 %v2412_v35, %v2423_v9 }
0x1524   :  { %v998_v16 = vpop.permute.xlu0 %997 }
0x1525   :  { %v1000_v56 = vmul.f32 %v998_v16, %v994_v55 }
0x1527   :  { %1002 = vrot.lane.b32.xlu1 %v1000_v56, %s2092_s29 }
0x1599   :  { %v1003_v62 = vpop.permute.xlu1 %1002 }
0x159a   :  { %v1005_v63 = vadd.f32 %v1003_v62, %v995_v59 }
0x159c   :  { %1999 = vtanh.f32 %v1005_v63 }
0x159d   :  { %2001 = vrcp.f32 %v774_v60 }
0x159e   :  { %2003 = vtanh.f32 %v770_v2 }
0x15a6   :  { %v2000_v0 = vpop.eup %1999 }
0x15a7   :  { %v2002_v3 = vpop.eup %2001  ;;  %1008 = vrot.lane.b32.xlu0 %v2000_v0, %s2091_s26 }
0x15a8   :  { %v2004_v4 = vpop.eup %2003 }
0x15a9   :  { %v778_v5 = vsel %vm2207_vm5, %v2004_v4, %v2002_v3 }
0x15aa   :  { %v779_v21 = vmul.f32 %v778_v5, %v2356_v18 }
0x15ab   :  { %781 = vrot.lane.b32.xlu0 %v778_v5, %s2091_s26 }
0x1619   :  { %v1009_v10 = vpop.permute.xlu0 %1008 }
0x161a   :  { %v1011_v6 = vmul.f32 %v1009_v10, %v994_v55 }
0x161c   :  { %v1013_v8 = vpack.c.bf16 %v1011_v6, %v1011_v6 }
0x161d   :  { %v782_v32 = vpop.permute.xlu0 %781 }
0x161e   :  { %v784_v19 = vmul.f32 %v782_v32, %v778_v5  ;;  %1015 = vrot.lane.b32.xlu1 %v1013_v8, %s2092_s29 }
0x1620   :  { %786 = vrot.lane.b32.xlu0 %v784_v19, %s2092_s29 }
0x1690   :  { %v1016_v20 = vpop.permute.xlu1 %1015 }
0x1691   :  { %1861 = vmatmul.mubr.msk.bf16.vlgmr.msra.gmra.mrb[24].mxu1 %vm169_vm2, %v1016_v20 }
0x1692   :  { %v787_v41 = vpop.permute.xlu0 %786  ;;  %1873 = vmatpush3.bf16.msra.mxu1 %v2386_v30  ;;  %1876 = vmatprep.mubr.msk.bf16.mxu1 %vm2090_vm1, %v2089_v1 }
0x1693   :  { %v2442_v39 = vadd.f32 %v787_v41, %v779_v21  ;;  %1874 = vmatprep.subr.bf16.mxu1 %v2089_v1 }
0x1695   :  { %2005 = vtanh.f32 %v2442_v39 }
0x1696   :  { %1875 = vmatpush3.bf16.msra.mxu1 %v2394_v33 }
0x1697   :  { %1888 = vmatprep.subr.bf16.mxu1 %v2089_v1 }
0x169f   :  { %v2006_v22 = vpop.eup %2005 }
0x16a0   :  { %792 = vrot.lane.b32.xlu0 %v2006_v22, %s2091_s26 }
0x16a4   :  { %560 = vrot.lane.b32.xlu0 %v2321_v31, %s2092_s29 }
0x16a8   :  { %718 = vrot.lane.b32.xlu0 %v2375_v23, %s2092_s29 }
0x1712   :  { %v793_v18 = vpop.permute.xlu0 %792 }
0x1713   :  { %v795_v45 = vmul.f32 %v793_v18, %v778_v5 }
0x1716   :  { %v561_v24 = vpop.permute.xlu0 %560 }
0x1717   :  { %563 = vst.msk [vmem:[#allocation3 + $0x20] sm:$0xff] %vm169_vm2, %v561_v24 }
0x171a   :  { %v719_v14 = vpop.permute.xlu0 %718 }
0x171b   :  { %721 = vst.msk [vmem:[#allocation3 + $0x30] sm:$0xff] %vm169_vm2, %v719_v14 }
0x171e   :  { %v816_v50 = vld [vmem:[#allocation3 + $0x20] sm:$0xff] }
0x1764   :  { %v1054_v7 = vpop.f32.mrb[24].mxu1 }
0x1765   :  { %v1060_v61 = vadd.f32 %v1054_v7, %v892_v25  ;;  %v1862_v26 = vpop.f32.mrb[25].mxu1  ;;  %v900_v25 = vadd.f32 %v2414_v37, %v2423_v9 }
0x1766   :  { %v1057_v11 = vpop.f32.mrb[26].mxu1 }
0x1767   :  { %v1683_v27 = vmul.f32 -1.442695, %v1060_v61  ;;  %v1863_v29 = vpop.f32.mrb[27].mxu1 }
0x1769   :  { %2007 = vpow2.f32 %v1683_v27 }
0x176a   :  { %2009 = vtanh.f32 %v1060_v61 }
0x1773   :  { %v2008_v31 = vpop.eup %2007 }
0x1774   :  { %v1064_v13 = vadd.f32 1.0, %v2008_v31  ;;  %v2010_v23 = vpop.eup %2009 }
0x1776   :  { %2011 = vrcp.f32 %v1064_v13 }
0x1780   :  { %v2012_v34 = vpop.eup %2011 }
0x1781   :  { %v1068_v36 = vsel %vm2207_vm5, %v2010_v23, %v2012_v34 }
0x1782   :  { %1071 = vrot.lane.b32.xlu1 %v1068_v36, %s2091_s26  ;;  %v1069_v42 = vmul.f32 %v1068_v36, %v1005_v63 }
0x17f4   :  { %v1072_v40 = vpop.permute.xlu1 %1071 }
0x17f5   :  { %v1074_v38 = vmul.f32 %v1072_v40, %v1068_v36 }
0x17f7   :  { %1076 = vrot.lane.b32.xlu1 %v1074_v38, %s2092_s29 }
0x1869   :  { %v1077_v2 = vpop.permute.xlu1 %1076 }
0x186a   :  { %v1079_v43 = vadd.f32 %v1077_v2, %v1069_v42 }
0x186c   :  { %2013 = vtanh.f32 %v1079_v43 }
0x1876   :  { %v2014_v44 = vpop.eup %2013 }
0x1877   :  { %1082 = vrot.lane.b32.xlu1 %v2014_v44, %s2091_s26 }
0x187b   :  { %639 = vrot.lane.b32.xlu1 %v2340_v52, %s2092_s29  ;;  %v818_v52 = vld [vmem:[#allocation3 + $0x30] sm:$0xff] }
0x187f   :  { %797 = vrot.lane.b32.xlu1 %v795_v45, %s2092_s29 }
0x18e9   :  { %v1083_v46 = vpop.permute.xlu1 %1082 }
0x18ea   :  { %v1085_v17 = vmul.f32 %v1083_v46, %v1068_v36 }
0x18ec   :  { %v1087_v47 = vpack.c.bf16 %v1085_v17, %v1085_v17 }
0x18ed   :  { %v640_v48 = vpop.permute.xlu1 %639 }
0x18ee   :  { %642 = vst.msk [vmem:[#allocation3 + $0x28] sm:$0xff] %vm169_vm2, %v640_v48  ;;  %1089 = vrot.lane.b32.xlu0 %v1087_v47, %s2092_s29 }
0x18f1   :  { %v2467_v49 = vpop.permute.xlu1 %797 }
0x18f2   :  { %800 = vst.msk [vmem:[#allocation3 + $0x38] sm:$0xff] %vm169_vm2, %v2467_v49 }
0x18f5   :  { %v817_v51 = vld [vmem:[#allocation3 + $0x28] sm:$0xff] }
0x18f6   :  { %v822_v12 = vpack.c.bf16 %v817_v51, %v816_v50 }
0x18f8   :  { %1844 = vmatprep.mubr.msk.bf16.mxu0 %vm169_vm2, %v822_v12 }
0x18f9   :  { %v819_v15 = vld [vmem:[#allocation3 + $0x38] sm:$0xff] }
0x18fa   :  { %v823_v53 = vpack.c.bf16 %v819_v15, %v818_v52 }
0x18fc   :  { %1845 = vmatmul.mubr.msk.bf16.gmra.mrb[24].mxu0 %vm169_vm2, %v823_v53 }
0x18fd   :  { %1868 = vmatprep.mubr.msk.bf16.mxu0 %vm2090_vm1, %v2089_v1 }
0x1960   :  { %v1090_v54 = vpop.permute.xlu0 %1089 }
0x1961   :  { %1869 = vmatmul.mubr.msk.bf16.vlgmr.msra.gmra.mrb[28].mxu0 %vm169_vm2, %v1090_v54 }
0x1962   :  { %1881 = vmatpush3.bf16.msra.mxu0 %v2386_v30  ;;  %1884 = vmatprep.mubr.msk.bf16.mxu0 %vm2090_vm1, %v2089_v1 }
0x1963   :  { %1882 = vmatprep.subr.bf16.mxu0 %v2089_v1 }
0x1966   :  { %1883 = vmatpush3.bf16.msra.mxu0 %v2394_v33 }
0x1967   :  { %1896 = vmatprep.subr.bf16.mxu0 %v2089_v1 }
0x19cf   :  { %v2482_v55 = vpop.f32.mrb[24].mxu0 }
0x19d0   :  { %v2484_v16 = vpop.f32.mrb[25].mxu0 }
0x19d1   :  { %v2486_v56 = vpop.f32.mrb[26].mxu0  ;;  %v905_v47 = vadd.f32 %v2423_v9, %v2484_v16 }
0x19d2   :  { %v2488_v57 = vpop.f32.mrb[27].mxu0 }
0x1a34   :  { %v1128_v59 = vpop.f32.mrb[28].mxu0 }
0x1a35   :  { %v1134_v60 = vadd.f32 %v1128_v59, %v897_v58  ;;  %v1870_v62 = vpop.f32.mrb[29].mxu0 }
0x1a36   :  { %v1131_v63 = vpop.f32.mrb[30].mxu0 }
0x1a37   :  { %v1685_v0 = vmul.f32 -1.442695, %v1134_v60  ;;  %v1871_v3 = vpop.f32.mrb[31].mxu0 }
0x1a39   :  { %2015 = vpow2.f32 %v1685_v0 }
0x1a3a   :  { %2017 = vtanh.f32 %v1134_v60 }
0x1a43   :  { %v2016_v4 = vpop.eup %2015 }
0x1a44   :  { %v1138_v5 = vadd.f32 1.0, %v2016_v4  ;;  %v2018_v10 = vpop.eup %2017 }
0x1a46   :  { %2019 = vrcp.f32 %v1138_v5 }
0x1a50   :  { %v2020_v6 = vpop.eup %2019 }
0x1a51   :  { %v1142_v8 = vsel %vm2207_vm5, %v2018_v10, %v2020_v6 }
0x1a52   :  { %1145 = vrot.lane.b32.xlu1 %v1142_v8, %s2091_s26  ;;  %v1143_v19 = vmul.f32 %v1142_v8, %v1079_v43 }
0x1ac4   :  { %v1146_v32 = vpop.permute.xlu1 %1145 }
0x1ac5   :  { %v1148_v35 = vmul.f32 %v1146_v32, %v1142_v8  ;;  %v908_v32 = vadd.f32 %v2423_v9, %v2488_v57 }
0x1ac7   :  { %1150 = vrot.lane.b32.xlu0 %v1148_v35, %s2092_s29 }
0x1b39   :  { %v1151_v20 = vpop.permute.xlu0 %1150 }
0x1b3a   :  { %v1153_v21 = vadd.f32 %v1151_v20, %v1143_v19 }
0x1b3c   :  { %2021 = vtanh.f32 %v1153_v21 }
0x1b46   :  { %v2022_v41 = vpop.eup %2021 }
0x1b47   :  { %1156 = vrot.lane.b32.xlu1 %v2022_v41, %s2091_s26 }
0x1bb9   :  { %v1157_v22 = vpop.permute.xlu1 %1156 }
0x1bba   :  { %v1159_v18 = vmul.f32 %v1157_v22, %v1142_v8 }
0x1bbc   :  { %v1161_v24 = vpack.c.bf16 %v1159_v18, %v1159_v18 }
0x1bbe   :  { %1163 = vrot.lane.b32.xlu0 %v1161_v24, %s2092_s29 }
0x1c30   :  { %v1164_v14 = vpop.permute.xlu0 %1163 }
0x1c31   :  { %1877 = vmatmul.mubr.msk.bf16.vlgmr.msra.gmra.mrb[28].mxu1 %vm169_vm2, %v1164_v14 }
0x1c32   :  { %1889 = vmatpush3.bf16.msra.mxu1 %v2386_v30  ;;  %1892 = vmatprep.mubr.msk.bf16.mxu1 %vm2090_vm1, %v2089_v1 }
0x1c33   :  { %1890 = vmatprep.subr.bf16.mxu1 %v2089_v1 }
0x1c36   :  { %1891 = vmatpush3.bf16.msra.mxu1 %v2394_v33 }
0x1c37   :  { %1904 = vmatprep.subr.bf16.mxu1 %v2089_v1 }
0x1d04   :  { %v1202_v7 = vpop.f32.mrb[28].mxu1 }
0x1d05   :  { %v1208_v61 = vadd.f32 %v1202_v7, %v900_v25  ;;  %v1878_v26 = vpop.f32.mrb[29].mxu1 }
0x1d06   :  { %v1205_v11 = vpop.f32.mrb[30].mxu1 }
0x1d07   :  { %v1687_v27 = vmul.f32 -1.442695, %v1208_v61  ;;  %v1879_v29 = vpop.f32.mrb[31].mxu1 }
0x1d09   :  { %2023 = vpow2.f32 %v1687_v27 }
0x1d0a   :  { %2025 = vtanh.f32 %v1208_v61 }
0x1d13   :  { %v2024_v31 = vpop.eup %2023 }
0x1d14   :  { %v1212_v13 = vadd.f32 1.0, %v2024_v31  ;;  %v2026_v23 = vpop.eup %2025 }
0x1d16   :  { %2027 = vrcp.f32 %v1212_v13 }
0x1d20   :  { %v2028_v34 = vpop.eup %2027 }
0x1d21   :  { %v1216_v36 = vsel %vm2207_vm5, %v2026_v23, %v2028_v34  ;;  %v913_v23 = vadd.f32 %v2482_v55, %v2423_v9 }
0x1d22   :  { %1219 = vrot.lane.b32.xlu1 %v1216_v36, %s2091_s26  ;;  %v1217_v38 = vmul.f32 %v1216_v36, %v1153_v21 }
0x1d94   :  { %v1220_v40 = vpop.permute.xlu1 %1219 }
0x1d95   :  { %v1222_v37 = vmul.f32 %v1220_v40, %v1216_v36 }
0x1d97   :  { %1224 = vrot.lane.b32.xlu0 %v1222_v37, %s2092_s29 }
0x1e09   :  { %v1225_v42 = vpop.permute.xlu0 %1224 }
0x1e0a   :  { %v1227_v2 = vadd.f32 %v1225_v42, %v1217_v38 }
0x1e0c   :  { %2029 = vtanh.f32 %v1227_v2 }
0x1e16   :  { %v2030_v43 = vpop.eup %2029 }
0x1e17   :  { %1230 = vrot.lane.b32.xlu1 %v2030_v43, %s2091_s26 }
0x1e89   :  { %v1231_v44 = vpop.permute.xlu1 %1230 }
0x1e8a   :  { %v1233_v45 = vmul.f32 %v1231_v44, %v1216_v36 }
0x1e8c   :  { %v1235_v46 = vpack.c.bf16 %v1233_v45, %v1233_v45 }
0x1e8e   :  { %1237 = vrot.lane.b32.xlu0 %v1235_v46, %s2092_s29 }
0x1f00   :  { %v1238_v17 = vpop.permute.xlu0 %1237 }
0x1f01   :  { %1885 = vmatmul.mubr.msk.bf16.vlgmr.msra.gmra.mrb[32].mxu0 %vm169_vm2, %v1238_v17 }
0x1f02   :  { %1897 = vmatpush3.bf16.msra.mxu0 %v2386_v30  ;;  %1900 = vmatprep.mubr.msk.bf16.mxu0 %vm2090_vm1, %v2089_v1 }
0x1f03   :  { %1898 = vmatprep.subr.bf16.mxu0 %v2089_v1 }
0x1f06   :  { %1899 = vmatpush3.bf16.msra.mxu0 %v2394_v33 }
0x1f07   :  { %1912 = vmatprep.subr.bf16.mxu0 %v2089_v1 }
0x1fd4   :  { %v1276_v48 = vpop.f32.mrb[32].mxu0 }
0x1fd5   :  { %v1282_v50 = vadd.f32 %v1276_v48, %v905_v47  ;;  %v1886_v51 = vpop.f32.mrb[33].mxu0 }
0x1fd6   :  { %v1279_v12 = vpop.f32.mrb[34].mxu0 }
0x1fd7   :  { %v1689_v52 = vmul.f32 -1.442695, %v1282_v50  ;;  %v1887_v15 = vpop.f32.mrb[35].mxu0 }
0x1fd9   :  { %2031 = vpow2.f32 %v1689_v52 }
0x1fda   :  { %2033 = vtanh.f32 %v1282_v50 }
0x1fe3   :  { %v2032_v53 = vpop.eup %2031 }
0x1fe4   :  { %v1286_v54 = vadd.f32 1.0, %v2032_v53  ;;  %v2034_v58 = vpop.eup %2033 }
0x1fe6   :  { %2035 = vrcp.f32 %v1286_v54  ;;  %v916_v54 = vadd.f32 %v2486_v56, %v2423_v9 }
0x1ff0   :  { %v2036_v59 = vpop.eup %2035 }
0x1ff1   :  { %v1290_v60 = vsel %vm2207_vm5, %v2034_v58, %v2036_v59 }
0x1ff2   :  { %1293 = vrot.lane.b32.xlu1 %v1290_v60, %s2091_s26  ;;  %v1291_v63 = vmul.f32 %v1290_v60, %v1227_v2 }
0x2064   :  { %v1294_v62 = vpop.permute.xlu1 %1293 }
0x2065   :  { %v1296_v16 = vmul.f32 %v1294_v62, %v1290_v60 }
0x2067   :  { %1298 = vrot.lane.b32.xlu0 %v1296_v16, %s2092_s29 }
0x20d9   :  { %v1299_v0 = vpop.permute.xlu0 %1298 }
0x20da   :  { %v1301_v3 = vadd.f32 %v1299_v0, %v1291_v63 }
0x20dc   :  { %2037 = vtanh.f32 %v1301_v3 }
0x20e6   :  { %v2038_v4 = vpop.eup %2037 }
0x20e7   :  { %1304 = vrot.lane.b32.xlu1 %v2038_v4, %s2091_s26 }
0x2159   :  { %v1305_v5 = vpop.permute.xlu1 %1304 }
0x215a   :  { %v1307_v10 = vmul.f32 %v1305_v5, %v1290_v60 }
0x215c   :  { %v1309_v6 = vpack.c.bf16 %v1307_v10, %v1307_v10 }
0x215e   :  { %1311 = vrot.lane.b32.xlu0 %v1309_v6, %s2092_s29 }
0x21d0   :  { %v1312_v8 = vpop.permute.xlu0 %1311 }
0x21d1   :  { %1893 = vmatmul.mubr.msk.bf16.vlgmr.msra.gmra.mrb[32].mxu1 %vm169_vm2, %v1312_v8 }
0x21d2   :  { %1905 = vmatpush3.bf16.msra.mxu1 %v2386_v30  ;;  %1908 = vmatprep.mubr.msk.bf16.mxu1 %vm2090_vm1, %v2089_v1 }
0x21d3   :  { %1906 = vmatprep.subr.bf16.mxu1 %v2089_v1 }
0x21d6   :  { %1907 = vmatpush3.bf16.msra.mxu1 %v2394_v33 }
0x22a4   :  { %v1350_v35 = vpop.f32.mrb[32].mxu1 }
0x22a5   :  { %v1356_v19 = vadd.f32 %v1350_v35, %v908_v32  ;;  %v1894_v20 = vpop.f32.mrb[33].mxu1  ;;  %v1933_v35 = vld [vmem:[%s2602_s5] sm:$0xff]  }
0x22a6   :  { %v1353_v21 = vpop.f32.mrb[34].mxu1 }
0x22a7   :  { %v1691_v41 = vmul.f32 -1.442695, %v1356_v19  ;;  %v1895_v22 = vpop.f32.mrb[35].mxu1 }
0x22a9   :  { %2039 = vpow2.f32 %v1691_v41 }
0x22aa   :  { %2041 = vtanh.f32 %v1356_v19 }
0x22b3   :  { %v2040_v18 = vpop.eup %2039 }
0x22b4   :  { %v1360_v24 = vadd.f32 1.0, %v2040_v18  ;;  %v2042_v30 = vpop.eup %2041 }
0x22b6   :  { %2043 = vrcp.f32 %v1360_v24 }
0x22c0   :  { %v2044_v14 = vpop.eup %2043 }
0x22c1   :  { %v1364_v25 = vsel %vm2207_vm5, %v2042_v30, %v2044_v14 }
0x22c2   :  { %1367 = vrot.lane.b32.xlu1 %v1364_v25, %s2091_s26  ;;  %v1365_v7 = vmul.f32 %v1364_v25, %v1301_v3 }
0x2334   :  { %v1368_v33 = vpop.permute.xlu1 %1367 }
0x2335   :  { %v1370_v57 = vmul.f32 %v1368_v33, %v1364_v25 }
0x2337   :  { %1372 = vrot.lane.b32.xlu0 %v1370_v57, %s2092_s29 }
0x23a9   :  { %v1373_v61 = vpop.permute.xlu0 %1372 }
0x23aa   :  { %v1375_v26 = vadd.f32 %v1373_v61, %v1365_v7 }
0x23ac   :  { %2045 = vtanh.f32 %v1375_v26 }
0x23b6   :  { %v2046_v11 = vpop.eup %2045 }
0x23b7   :  { %1378 = vrot.lane.b32.xlu1 %v2046_v11, %s2091_s26 }
0x2429   :  { %v1379_v27 = vpop.permute.xlu1 %1378 }
0x242a   :  { %v1381_v29 = vmul.f32 %v1379_v27, %v1364_v25 }
0x242c   :  { %v1383_v31 = vpack.c.bf16 %v1381_v29, %v1381_v29 }
0x242e   :  { %1385 = vrot.lane.b32.xlu0 %v1383_v31, %s2092_s29 }
0x24a0   :  { %v1386_v13 = vpop.permute.xlu0 %1385 }
0x24a1   :  { %1901 = vmatmul.mubr.msk.bf16.vlgmr.msra.gmra.mrb[36].mxu0 %vm169_vm2, %v1386_v13 }
0x24a2   :  { %1916 = vmatprep.mubr.msk.bf16.mxu0 %vm2090_vm1, %v2089_v1  ;;  %1913 = vmatpush3.bf16.msra.mxu0 %v1933_v35 }
0x24a3   :  { %1914 = vmatprep.subr.bf16.mxu0 %v2089_v1 }
0x24a6   :  { %1915 = vmatpush3.bf16.msra.mxu0 %v1934_v28 }
0x2574   :  { %v1424_v34 = vpop.f32.mrb[36].mxu0 }
0x2575   :  { %v1430_v36 = vadd.f32 %v1424_v34, %v913_v23  ;;  %v1902_v40 = vpop.f32.mrb[37].mxu0 }
0x2576   :  { %v1427_v37 = vpop.f32.mrb[38].mxu0 }
0x2577   :  { %v1693_v38 = vmul.f32 -1.442695, %v1430_v36  ;;  %v1903_v42 = vpop.f32.mrb[39].mxu0 }
0x2579   :  { %2047 = vpow2.f32 %v1693_v38 }
0x257a   :  { %2049 = vtanh.f32 %v1430_v36 }
0x2583   :  { %v2048_v2 = vpop.eup %2047 }
0x2584   :  { %v1434_v43 = vadd.f32 1.0, %v2048_v2  ;;  %v2050_v44 = vpop.eup %2049 }
0x2586   :  { %2051 = vrcp.f32 %v1434_v43 }
0x2590   :  { %v2052_v45 = vpop.eup %2051 }
0x2591   :  { %v1438_v46 = vsel %vm2207_vm5, %v2050_v44, %v2052_v45 }
0x2592   :  { %1441 = vrot.lane.b32.xlu1 %v1438_v46, %s2091_s26  ;;  %v1439_v47 = vmul.f32 %v1438_v46, %v1375_v26 }
0x2604   :  { %v1442_v17 = vpop.permute.xlu1 %1441 }
0x2605   :  { %v1444_v55 = vmul.f32 %v1442_v17, %v1438_v46 }
0x2607   :  { %1446 = vrot.lane.b32.xlu0 %v1444_v55, %s2092_s29 }
0x2679   :  { %v1447_v48 = vpop.permute.xlu0 %1446 }
0x267a   :  { %v1449_v50 = vadd.f32 %v1447_v48, %v1439_v47 }
0x267c   :  { %2053 = vtanh.f32 %v1449_v50 }
0x2686   :  { %v2054_v51 = vpop.eup %2053 }
0x2687   :  { %1452 = vrot.lane.b32.xlu1 %v2054_v51, %s2091_s26 }
0x26f9   :  { %v1453_v12 = vpop.permute.xlu1 %1452 }
0x26fa   :  { %v1455_v52 = vmul.f32 %v1453_v12, %v1438_v46 }
0x26fc   :  { %v1457_v15 = vpack.c.bf16 %v1455_v52, %v1455_v52 }
0x26fe   :  { %1459 = vrot.lane.b32.xlu0 %v1457_v15, %s2092_s29 }
0x2770   :  { %v1460_v53 = vpop.permute.xlu0 %1459 }
0x2771   :  { %1909 = vmatmul.mubr.msk.bf16.vlgmr.msra.gmra.mrb[36].mxu1 %vm169_vm2, %v1460_v53 }
0x2844   :  { %v1498_v58 = vpop.f32.mrb[36].mxu1 }
0x2845   :  { %v1504_v59 = vadd.f32 %v1498_v58, %v916_v54  ;;  %v1910_v60 = vpop.f32.mrb[37].mxu1 }
0x2846   :  { %v1501_v62 = vpop.f32.mrb[38].mxu1 }
0x2847   :  { %v1695_v16 = vmul.f32 -1.442695, %v1504_v59  ;;  %v1911_v63 = vpop.f32.mrb[39].mxu1 }
0x2849   :  { %2055 = vpow2.f32 %v1695_v16 }
0x284a   :  { %2057 = vtanh.f32 %v1504_v59 }
0x2853   :  { %v2056_v0 = vpop.eup %2055 }
0x2854   :  { %v1508_v3 = vadd.f32 1.0, %v2056_v0  ;;  %v2058_v4 = vpop.eup %2057 }
0x2856   :  { %2059 = vrcp.f32 %v1508_v3 }
0x2860   :  { %v2060_v5 = vpop.eup %2059 }
0x2861   :  { %v1512_v10 = vsel %vm2207_vm5, %v2058_v4, %v2060_v5 }
0x2862   :  { %1515 = vrot.lane.b32.xlu1 %v1512_v10, %s2091_s26  ;;  %v1513_v56 = vmul.f32 %v1512_v10, %v1449_v50 }
0x28d4   :  { %v1516_v6 = vpop.permute.xlu1 %1515 }
0x28d5   :  { %v1518_v9 = vmul.f32 %v1516_v6, %v1512_v10 }
0x28d7   :  { %1520 = vrot.lane.b32.xlu0 %v1518_v9, %s2092_s29 }
0x2949   :  { %v1521_v8 = vpop.permute.xlu0 %1520 }
0x294a   :  { %v1523_v32 = vadd.f32 %v1521_v8, %v1513_v56 }
0x294c   :  { %2061 = vtanh.f32 %v1523_v32 }
0x2956   :  { %v2062_v19 = vpop.eup %2061 }
0x2957   :  { %1526 = vrot.lane.b32.xlu1 %v2062_v19, %s2091_s26 }
0x29c9   :  { %v1527_v20 = vpop.permute.xlu1 %1526 }
0x29ca   :  { %v1529_v21 = vmul.f32 %v1527_v20, %v1512_v10 }
0x29cc   :  { %v1530_v41 = vpack.c.bf16 %v1529_v21, %v1529_v21  ;;  %1604 = vrot.lane.b32.xlu1 %v1529_v21, %s2091_s26 }
0x29ce   :  { %1543 = vrot.lane.b32.xlu0 %v1530_v41, %s2092_s29 }
0x29d2   :  { %1611 = vrot.lane.b32.xlu0 %v2442_v39, %s2093_s19  ;;  %v1696_v39 = vld [vmem:[%s2603_s6] ss:$0 sm:$0xff] }
0x2a3e   :  { %v1605_v22 = vpop.permute.xlu1 %1604 }
0x2a3f   :  { %v1607_v18 = vsel %vm169_vm2, %v2467_v49, %v1605_v22 }
0x2a40   :  { %1609 = vst.msk [vmem:[%s2605_s8] sm:$0x3] %vm1608_vm6, %v1607_v18  ;;  %v1544_v1 = vpop.permute.xlu0 %1543  ;;  %s2094_s8 = smov [#allocation4]  }
0x2a41   :  { %1917 = vmatmul.mubr.msk.bf16.vlgmr.msra.gmra.mrb[40].mxu0 %vm169_vm2, %v1544_v1  ;;  %s1622_s10 = sshll.u32 %s2094_s8, 4  ;;  %s1623_s10 = int_to_ptr.vmem [resolvable:$true] %s1622_s10 }
0x2a42   :  { %s2065_s11 = scalar_lea.vmem %s1623_s10, 32  ;;  %p2070_p1 = scmp.lt.s32.totalorder %s1623_s10, %s1623_s10 }
0x2a43   :  { %p2066_p0 = scmp.ne.s32.totalorder %s1623_s10, %s2065_s11  ;;  %p2071_p2 = scmp.lt.s32.totalorder %s2065_s11, %s2065_s11 }
0x2a44   :  { %v1612_v24 = vpop.permute.xlu0 %1611 }
0x2a45   :  { %v1614_v30 = vsel %vm169_vm2, %v1612_v24, %v1523_v32  ;;  %p2072_p3 = por %p2071_p2, %p2070_p1 }
0x2a46   :  { %1615 = vst.msk [vmem:[%s2606_s9] sm:$0x3] %vm1608_vm6, %v1614_v30 }
0x2a47   :  { %p2073_p4 = pnand %p2072_p3, %p2066_p0 }
0x2b14   :  { %v1594_v14 = vpop.f32.mrb[40].mxu0 }
0x2b15   :  { %v1595_v49 = vadd.f32 %v1696_v39, %v1594_v14  ;;  %v1918_v25 = vpop.f32.mrb[41].mxu0 }
0x2b16   :  { %v1597_v33 = vpop.f32.mrb[42].mxu0 }
0x2b17   :  { %2063 = vtanh.f32 %v1595_v49  ;;  %v1919_v57 = vpop.f32.mrb[43].mxu0 }
0x2b21   :  { %v2064_v7 = vpop.eup %2063 }
0x2b22   :  { %1602 = vst.msk [vmem:[#allocation4] sm:$0x3] %vm1601_vm7, %v2064_v7 }
0x2b23   :  { %2076 = shalt.err (!%p2073_p4)
}
0x2b24   :  { %s2077_s12 = scalar_lea.hbm %s2604_s7, 32 }
0x2b25   :  { %p2078_p5 = scmp.ne.s32.totalorder %s2604_s7, %s2077_s12  ;;  %p2081_p6 = scmp.lt.u32.totalorder %s2077_s12, %s2604_s7 }
0x2b27   :  { %p2083_p7 = pnand %p2081_p6, %p2078_p5 }
0x2b29   :  { %2086 = shalt.err (!%p2083_p7)
}
0x2b2a   :  { %1625 = dma.vmem_to_hbm [thread:$0]  %s1623_s10, 32, %s2604_s7, [#allocation5]  }
0x2b2b   :  { %2087 = dma.done.wait [#allocation5], 32  }
0x2b2c   :  { %2088 = vsyncadd [#allocation5], 4294967264 }
0x2b2d   :  { %1637 = vsyncpa [#allocation5], 1 }

</bundles_post_ra>
